<compile_context>
chip_gen: v7x
topology: tpu7x:2x2x1
jax: 0.10.0
libtpu: 0.0.40
codegen_flags: <defaults>
</compile_context>

<pallas_src>
import math

import jax
import jax.numpy as jnp
from jax.experimental import pallas as pl
from jax.experimental.pallas import tpu as pltpu

NUM_A = 3   # fixed in the module (self.num_A = 3)
V = 25      # fixed in the module (self.V = 25)


def _roundup(n, m):
    return -(-n // m) * m


def unit_gcn_kernel(x_ref, a_ref, w_ref, shift_ref, o_ref):
    # x_ref:     (Nb, 1, C, Tb*V)     lane-dense input block, compute dtype
    # a_ref:     (NUM_A, Tb*V, Tb*V)  block-diagonal I_Tb (x) A_i, compute dtype
    # w_ref:     (NUM_A, O, C)        BN-scale-folded 1x1-conv weights, compute dtype
    # shift_ref: (O, 1)               folded conv biases + BN shift, float32
    # o_ref:     (Nb, 1, O, Tb*V)     lane-dense output block, float32
    nb = x_ref.shape[0]
    tv = x_ref.shape[3]
    out_ch = o_ref.shape[2]
    cdt = w_ref.dtype

    shift = shift_ref[...]                         # (O, 1), hoisted out of the loops

    for b in range(nb):                            # nb is a small compile-time constant
        xl = x_ref[b, 0]                           # (C, Tb*V), lane-dense
        acc = jnp.zeros((out_ch, tv), jnp.float32)
        for i in range(NUM_A):
            # Graph aggregation over nodes as one lane-dense MXU matmul.
            zi = jnp.dot(xl, a_ref[i], preferred_element_type=jnp.float32)
            # Channel mix: (O, C) @ (C, Tb*V), lane-dense N, f32 accumulation.
            acc = acc + jnp.dot(w_ref[i], zi.astype(cdt),
                                preferred_element_type=jnp.float32)
        # f32 epilogue (folded bias + BN shift, ReLU) and one lane-dense store.
        o_ref[b, 0] = jnp.maximum(acc + shift, 0.0).astype(o_ref.dtype)


def _vmem_bytes_estimate(n_block, c_in, c_out, tv, itemsize):
    """Rough per-step VMEM need: padded, double-buffered tiles + live temps."""
    sub = max(8, 32 // itemsize)      # sublane tile: f32 -> 8, bf16 -> 16
    x_blk = n_block * _roundup(c_in, sub) * _roundup(tv, 128) * itemsize
    o_blk = n_block * _roundup(c_out, 8) * _roundup(tv, 128) * 4
    a_blk = NUM_A * _roundup(tv, sub) * _roundup(tv, 128) * itemsize
    w_blk = NUM_A * _roundup(c_out, sub) * _roundup(c_in, 128) * itemsize
    s_blk = _roundup(c_out, 8) * 128 * 4
    zi = (_roundup(c_in, 8) * _roundup(tv, 128) * 4
          + _roundup(c_in, sub) * _roundup(tv, 128) * itemsize)
    acc = _roundup(c_out, 8) * _roundup(tv, 128) * 4
    need = 2 * (x_blk + o_blk + a_blk + w_blk + s_blk) + zi + 2 * acc
    return 2 * need                    # 2x headroom for compiler temporaries


def unit_gcn_forward(x, A, W, b, gamma, beta, run_mean, run_var, eps=1e-5,
                     compute_dtype=jnp.bfloat16, t_block=None, n_block=1):
    """x: (N, C, T, V) f32 -> (N, O, T, V) f32 (eval-mode BN).

    compute_dtype: dtype of the matmul inputs (bf16 by default; accumulation
                   and the epilogue are always f32).
    t_block:       temporal tile (must divide T).  None -> largest divisor <= 32.
    n_block:       batch items per grid step (use >1 when C*T is small).
    """
    N, C, T, Vdim = x.shape
    assert Vdim == V
    O = W.shape[1]
    if t_block is None:
        t_block = max(d for d in range(1, min(T, 32) + 1) if T % d == 0)
    assert T % t_block == 0, "pad T to a multiple of t_block"
    assert N % n_block == 0
    n_t = T // t_block
    tv = t_block * Vdim

    # ---- host-side folding (trace time) ------------------------------------
    #   BN(y) = (y - mean) * gamma/sqrt(var+eps) + beta
    # The scale goes into the conv weights, everything additive into `shift`.
    scale = gamma / jnp.sqrt(run_var + eps)                           # (O,)
    w_fold = (W * scale[None, :, None]).astype(compute_dtype)         # (3, O, C)
    shift = (((jnp.sum(b, axis=0) - run_mean) * scale + beta)[:, None]
             .astype(jnp.float32))                                    # (O, 1)

    # Block-diagonal Kronecker lift of each adjacency: B_i = I_{t_block} (x) A_i,
    # so the graph aggregation is a single lane-dense matmul and the kernel
    # never has to split/merge the lane dimension.
    eye_t = jnp.eye(t_block, dtype=A.dtype)
    a_lift = jnp.stack([jnp.kron(eye_t, A[i]) for i in range(NUM_A)]) \
               .astype(compute_dtype)                                 # (3, Tb*V, Tb*V)

    # Lane-dense x: (N, C, T, V) -> (N, n_t, C, Tb*V).  For n_t == 1 this only
    # moves a size-1 axis (free metadata reshape); only the chunked-T path pays
    # one transpose of x.
    x_in = (x.astype(compute_dtype)
             .reshape(N, C, n_t, tv)
             .transpose(0, 2, 1, 3))                                  # (N, n_t, C, Tb*V)

    vmem_limit = int(min(max(_vmem_bytes_estimate(
                                 n_block, C, O, tv,
                                 jnp.dtype(compute_dtype).itemsize),
                             32 << 20),      # never below the default scoped limit
                         56 << 20))          # stay inside v7x's 64 MiB physical VMEM

    y = pl.pallas_call(
        unit_gcn_kernel,
        out_shape=jax.ShapeDtypeStruct((N, n_t, O, tv), jnp.float32),
        grid=(N // n_block, n_t),
        in_specs=[
            pl.BlockSpec((n_block, 1, C, tv), lambda n, t: (n, t, 0, 0)),
            pl.BlockSpec((NUM_A, tv, tv), lambda n, t: (0, 0, 0)),
            pl.BlockSpec((NUM_A, O, C), lambda n, t: (0, 0, 0)),
            pl.BlockSpec((O, 1), lambda n, t: (0, 0)),
        ],
        out_specs=pl.BlockSpec((n_block, 1, O, tv), lambda n, t: (n, t, 0, 0)),
        compiler_params=pltpu.CompilerParams(
            dimension_semantics=("parallel", "parallel"),
            vmem_limit_bytes=vmem_limit),
    )(x_in, a_lift, w_fold, shift)

    # (N, n_t, O, Tb*V) -> (N, O, T, V): free when n_t == 1 (size-1 axis move).
    y = y.reshape(N, n_t, O, t_block, Vdim)
    y = jnp.transpose(y, (0, 2, 1, 3, 4)).reshape(N, O, T, Vdim)
    return y


def unit_gcn_ref(x, A, W, b, gamma, beta, run_mean, run_var, eps=1e-5):
    """Pure-JAX reference of the PyTorch forward (eval-mode BN)."""
    xa = jnp.einsum('nctw,awv->anctv', x, A)
    y = jnp.einsum('aoc,anctv->notv', W, xa)
    y = y + jnp.sum(b, axis=0)[None, :, None, None]
    inv_std = 1.0 / jnp.sqrt(run_var + eps)
    y = (y - run_mean[None, :, None, None]) * (gamma * inv_std)[None, :, None, None] \
        + beta[None, :, None, None]
    return jnp.maximum(y, 0.0)


if __name__ == "__main__":
    key = jax.random.PRNGKey(0)
    kx, kA, kW, kb = jax.random.split(key, 4)

    N, C_in, C_out, T = 2, 4, 8, 16

    x = jax.random.normal(kx, (N, C_in, T, V), jnp.float32)
    # adjacency stack (normally supplied to __init__)
    A = jax.random.uniform(kA, (NUM_A, V, V), jnp.float32)
    # conv_init: weight ~ N(0, sqrt(2 / (out_channels * kernel_size))); kernel_size=1
    W = jax.random.normal(kW, (NUM_A, C_out, C_in), jnp.float32) * math.sqrt(2.0 / C_out)
    # Conv2d default bias init: U(-1/sqrt(fan_in), 1/sqrt(fan_in)), fan_in = C_in
    b = jax.random.uniform(kb, (NUM_A, C_out), jnp.float32,
                           minval=-1.0 / math.sqrt(C_in), maxval=1.0 / math.sqrt(C_in))
    # BatchNorm2d(out_channels) at its init values, eval mode
    gamma = jnp.ones((C_out,), jnp.float32)
    beta = jnp.zeros((C_out,), jnp.float32)
    run_mean = jnp.zeros((C_out,), jnp.float32)
    run_var = jnp.ones((C_out,), jnp.float32)

    bn_args = (gamma, beta, run_mean, run_var)
    y_ref = unit_gcn_ref(x, A, W, b, *bn_args)

    # 1) f32 compute path, single temporal block: tight eval-mode check.
    y32 = jax.block_until_ready(
        unit_gcn_forward(x, A, W, b, *bn_args, compute_dtype=jnp.float32))
    assert y32.shape == (N, C_out, T, V)
    assert jnp.allclose(y32, y_ref, atol=2e-4, rtol=2e-4), \
        f"f32 max abs err = {float(jnp.max(jnp.abs(y32 - y_ref)))}"

    # 2) f32 with T-chunking + batch blocking (grid=(1, 2)) — same semantics.
    y32c = jax.block_until_ready(
        unit_gcn_forward(x, A, W, b, *bn_args, compute_dtype=jnp.float32,
                         t_block=8, n_block=2))
    assert jnp.allclose(y32c, y_ref, atol=2e-4, rtol=2e-4), \
        f"chunked f32 max abs err = {float(jnp.max(jnp.abs(y32c - y_ref)))}"

    # 3) default bf16 matmul-input path: compare against a reference that sees
    #    the same bf16-rounded inputs (accumulation stays f32 in both paths).
    x_q = x.astype(jnp.bfloat16).astype(jnp.float32)
    A_q = A.astype(jnp.bfloat16).astype(jnp.float32)
    W_q = W.astype(jnp.bfloat16).astype(jnp.float32)
    y_bf = jax.block_until_ready(
        unit_gcn_forward(x_q, A_q, W_q, b, *bn_args))
    y_ref_q = unit_gcn_ref(x_q, A_q, W_q, b, *bn_args)
    assert jnp.allclose(y_bf, y_ref_q, atol=1e-1, rtol=5e-2), \
        f"bf16 max abs err = {float(jnp.max(jnp.abs(y_bf - y_ref_q)))}"

    print("KERNEL_OK")
</pallas_src>

<mosaic_0001>
module attributes {stable_mosaic.version = 11 : i64} {
  func.func @unit_gcn_kernel(%arg0: i32, %arg1: i32, %arg2: memref<1x1x4x400xf32, #tpu.memory_space<vmem>>, %arg3: memref<3x400x400xf32, #tpu.memory_space<vmem>>, %arg4: memref<3x8x4xf32, #tpu.memory_space<vmem>>, %arg5: memref<8x1xf32, #tpu.memory_space<vmem>>, %arg6: memref<1x1x8x400xf32, #tpu.memory_space<vmem>>) attributes {dimension_semantics = [#tpu.dimension_semantics<parallel>, #tpu.dimension_semantics<parallel>], iteration_bounds = array<i64: 2, 1>, scalar_prefetch = 0 : i64, scratch_operands = 0 : i64, tpu.core_type = #tpu.core_type<tc>, window_params = [{transform_indices = @transform_0, window_bounds = array<i64: 1, 1, 4, 400>}, {pipeline_mode = #tpu.pipeline_mode<synchronous>, transform_indices = @transform_1, window_bounds = array<i64: 3, 400, 400>}, {pipeline_mode = #tpu.pipeline_mode<synchronous>, transform_indices = @transform_2, window_bounds = array<i64: 3, 8, 4>}, {pipeline_mode = #tpu.pipeline_mode<synchronous>, transform_indices = @transform_3, window_bounds = array<i64: 8, 1>}, {transform_indices = @transform_4, window_bounds = array<i64: 1, 1, 8, 400>}]} {
    %c0 = arith.constant 0 : index
    %c0_0 = arith.constant 0 : index
    %0 = vector.load %arg5[%c0, %c0_0] : memref<8x1xf32, #tpu.memory_space<vmem>>, vector<8x1xf32>
    %c0_1 = arith.constant 0 : index
    %c0_2 = arith.constant 0 : index
    %c0_3 = arith.constant 0 : index
    %c0_4 = arith.constant 0 : index
    %1 = vector.load %arg2[%c0_1, %c0_2, %c0_3, %c0_4] : memref<1x1x4x400xf32, #tpu.memory_space<vmem>>, vector<1x1x4x400xf32>
    %2 = vector.shape_cast %1 : vector<1x1x4x400xf32> to vector<4x400xf32>
    %cst = arith.constant 0.000000e+00 : f32
    %3 = vector.broadcast %cst : f32 to vector<8x400xf32>
    %c0_5 = arith.constant 0 : index
    %c0_6 = arith.constant 0 : index
    %c0_7 = arith.constant 0 : index
    %4 = vector.load %arg3[%c0_5, %c0_6, %c0_7] : memref<3x400x400xf32, #tpu.memory_space<vmem>>, vector<1x400x400xf32>
    %5 = vector.shape_cast %4 : vector<1x400x400xf32> to vector<400x400xf32>
    %cst_8 = arith.constant dense<0.000000e+00> : vector<4x400xf32>
    %6 = tpu.matmul %2, %5, %cst_8 {dimension_numbers = #tpu.dot_dimension_numbers<[1], [0], [0], [1], [0, 0, 1, 1], [], []>} : vector<4x400xf32>, vector<400x400xf32>, vector<4x400xf32> -> vector<4x400xf32>
    %c0_9 = arith.constant 0 : index
    %c0_10 = arith.constant 0 : index
    %c0_11 = arith.constant 0 : index
    %7 = vector.load %arg4[%c0_9, %c0_10, %c0_11] : memref<3x8x4xf32, #tpu.memory_space<vmem>>, vector<1x8x4xf32>
    %8 = vector.shape_cast %7 : vector<1x8x4xf32> to vector<8x4xf32>
    %cst_12 = arith.constant dense<0.000000e+00> : vector<8x400xf32>
    %9 = tpu.matmul %8, %6, %cst_12 {dimension_numbers = #tpu.dot_dimension_numbers<[1], [0], [0], [1], [0, 0, 1, 1], [], []>} : vector<8x4xf32>, vector<4x400xf32>, vector<8x400xf32> -> vector<8x400xf32>
    %10 = arith.addf %3, %9 : vector<8x400xf32>
    %c1 = arith.constant 1 : index
    %c0_13 = arith.constant 0 : index
    %c0_14 = arith.constant 0 : index
    %11 = vector.load %arg3[%c1, %c0_13, %c0_14] : memref<3x400x400xf32, #tpu.memory_space<vmem>>, vector<1x400x400xf32>
    %12 = vector.shape_cast %11 : vector<1x400x400xf32> to vector<400x400xf32>
    %cst_15 = arith.constant dense<0.000000e+00> : vector<4x400xf32>
    %13 = tpu.matmul %2, %12, %cst_15 {dimension_numbers = #tpu.dot_dimension_numbers<[1], [0], [0], [1], [0, 0, 1, 1], [], []>} : vector<4x400xf32>, vector<400x400xf32>, vector<4x400xf32> -> vector<4x400xf32>
    %c1_16 = arith.constant 1 : index
    %c0_17 = arith.constant 0 : index
    %c0_18 = arith.constant 0 : index
    %14 = vector.load %arg4[%c1_16, %c0_17, %c0_18] : memref<3x8x4xf32, #tpu.memory_space<vmem>>, vector<1x8x4xf32>
    %15 = vector.shape_cast %14 : vector<1x8x4xf32> to vector<8x4xf32>
    %cst_19 = arith.constant dense<0.000000e+00> : vector<8x400xf32>
    %16 = tpu.matmul %15, %13, %cst_19 {dimension_numbers = #tpu.dot_dimension_numbers<[1], [0], [0], [1], [0, 0, 1, 1], [], []>} : vector<8x4xf32>, vector<4x400xf32>, vector<8x400xf32> -> vector<8x400xf32>
    %17 = arith.addf %10, %16 : vector<8x400xf32>
    %c2 = arith.constant 2 : index
    %c0_20 = arith.constant 0 : index
    %c0_21 = arith.constant 0 : index
    %18 = vector.load %arg3[%c2, %c0_20, %c0_21] : memref<3x400x400xf32, #tpu.memory_space<vmem>>, vector<1x400x400xf32>
    %19 = vector.shape_cast %18 : vector<1x400x400xf32> to vector<400x400xf32>
    %cst_22 = arith.constant dense<0.000000e+00> : vector<4x400xf32>
    %20 = tpu.matmul %2, %19, %cst_22 {dimension_numbers = #tpu.dot_dimension_numbers<[1], [0], [0], [1], [0, 0, 1, 1], [], []>} : vector<4x400xf32>, vector<400x400xf32>, vector<4x400xf32> -> vector<4x400xf32>
    %c2_23 = arith.constant 2 : index
    %c0_24 = arith.constant 0 : index
    %c0_25 = arith.constant 0 : index
    %21 = vector.load %arg4[%c2_23, %c0_24, %c0_25] : memref<3x8x4xf32, #tpu.memory_space<vmem>>, vector<1x8x4xf32>
    %22 = vector.shape_cast %21 : vector<1x8x4xf32> to vector<8x4xf32>
    %cst_26 = arith.constant dense<0.000000e+00> : vector<8x400xf32>
    %23 = tpu.matmul %22, %20, %cst_26 {dimension_numbers = #tpu.dot_dimension_numbers<[1], [0], [0], [1], [0, 0, 1, 1], [], []>} : vector<8x4xf32>, vector<4x400xf32>, vector<8x400xf32> -> vector<8x400xf32>
    %24 = arith.addf %17, %23 : vector<8x400xf32>
    %25 = vector.broadcast %0 : vector<8x1xf32> to vector<8x400xf32>
    %26 = arith.addf %24, %25 : vector<8x400xf32>
    %cst_27 = arith.constant 0.000000e+00 : f32
    %27 = vector.broadcast %cst_27 : f32 to vector<8x400xf32>
    %28 = arith.maximumf %26, %27 : vector<8x400xf32>
    %c0_28 = arith.constant 0 : index
    %c0_29 = arith.constant 0 : index
    %c0_30 = arith.constant 0 : index
    %c0_31 = arith.constant 0 : index
    %29 = vector.load %arg6[%c0_28, %c0_29, %c0_30, %c0_31] : memref<1x1x8x400xf32, #tpu.memory_space<vmem>>, vector<1x1x8x400xf32>
    %30 = vector.shape_cast %29 : vector<1x1x8x400xf32> to vector<8x400xf32>
    %31 = vector.shape_cast %28 : vector<8x400xf32> to vector<1x1x8x400xf32>
    tpu.vector_store %arg6[%c0_28, %c0_29, %c0_30, %c0_31], %31 {strides = array<i32>} : memref<1x1x8x400xf32, #tpu.memory_space<vmem>>, vector<1x1x8x400xf32>,
    return
  }
  func.func @transform_0(%arg0: i32, %arg1: i32) -> (i32, i32, i32, i32) {
    %c0_i32 = arith.constant 0 : i32
    %c0_i32_0 = arith.constant 0 : i32
    %c0_i32_1 = arith.constant 0 : i32
    return %arg0, %arg1, %c0_i32, %c0_i32_0 : i32, i32, i32, i32
  }
  func.func @transform_1(%arg0: i32, %arg1: i32) -> (i32, i32, i32) {
    %c0_i32 = arith.constant 0 : i32
    %c0_i32_0 = arith.constant 0 : i32
    %c0_i32_1 = arith.constant 0 : i32
    %c0_i32_2 = arith.constant 0 : i32
    return %c0_i32, %c0_i32_0, %c0_i32_1 : i32, i32, i32
  }
  func.func @transform_2(%arg0: i32, %arg1: i32) -> (i32, i32, i32) {
    %c0_i32 = arith.constant 0 : i32
    %c0_i32_0 = arith.constant 0 : i32
    %c0_i32_1 = arith.constant 0 : i32
    %c0_i32_2 = arith.constant 0 : i32
    return %c0_i32, %c0_i32_0, %c0_i32_1 : i32, i32, i32
  }
  func.func @transform_3(%arg0: i32, %arg1: i32) -> (i32, i32) {
    %c0_i32 = arith.constant 0 : i32
    %c0_i32_0 = arith.constant 0 : i32
    %c0_i32_1 = arith.constant 0 : i32
    return %c0_i32, %c0_i32_0 : i32, i32
  }
  func.func @transform_4(%arg0: i32, %arg1: i32) -> (i32, i32, i32, i32) {
    %c0_i32 = arith.constant 0 : i32
    %c0_i32_0 = arith.constant 0 : i32
    %c0_i32_1 = arith.constant 0 : i32
    return %arg0, %arg1, %c0_i32, %c0_i32_0 : i32, i32, i32, i32
  }
}

</mosaic_0001>

<bundles_post_ra>
// kernel: tpu_custom_call.1
= control target key start
LH: loop header
LB: loop body
LE: loop exit
PB: predicated region body
PF: predicated region fallthrough
CT: control target
= control target key end

     0   :  { %9 = vsyncpa [#allocation3], 0  ;;  %s3551_s0 = inlined_call_operand.hbm [shape: f32[2,1,4,400], index: 0, kind: input, shape index: {}]   ;;  %s3552_s1 = inlined_call_operand.hbm [shape: f32[3,400,400], index: 1, kind: input, shape index: {}]   ;;  %s3553_s2 = inlined_call_operand.vmem [shape: f32[3,8,4], index: 2, kind: input, shape index: {}]   ;;  %s3554_s3 = inlined_call_operand.vmem [shape: f32[8,1], index: 3, kind: input, shape index: {}]   ;;  %s3555_s4 = inlined_call_operand.hbm [shape: f32[2,1,8,400], index: 4, kind: output, shape index: {}]  }
   0x1   :  { %11 = vsyncpa [#allocation3 + $0x1], 0 }
   0x2   :  { %12 = vsyncpa [#allocation6], 0 }
   0x3   :  { %13 = vsyncpa [#allocation4], 0 }
   0x4   :  { %15 = vsyncpa [#allocation4 + $0x1], 0  ;;  %s3247_s15 = smov 0   ;;  %s3249_s16 = smov 0  }
   0x5   :  { %s3251_s17 = smov 0   ;;  %s3253_s18 = smov 0  }
   0x6   :  { %s3255_s19 = smov 0   ;;  %s3257_s20 = smov 0  }
   0x7 LB: > { %s2322_s21 = sadd.s32 4294967295, %s3213_s20   ;;  %s2323_s22 = sadd.s32 4294967294, %s3213_s20   ;;  %s3213_s20 = sphi %s3257_s20, %s21_s20   ;;  %s3209_s19 = sphi %s3255_s19, %s3579_s19   ;;  %s3205_s18 = sphi %s3253_s18, %s3578_s18   ;;  %s3201_s17 = sphi %s3251_s17, %s3577_s17   ;;  %s3197_s16 = sphi %s3249_s16, %s3576_s16   ;;  %s3193_s15 = sphi %s3247_s15, %s3575_s15  }
   0x8   : > { %p55_p0 = scmp.ne.s32.totalorder %s3197_s16, %s3193_s15  ;;  %p3281_p1 = scmp.eq.s32.totalorder %s2322_s21, 0 }
   0x9   : > { %p3285_p2 = scmp.eq.s32.totalorder %s2322_s21, 1  ;;  %p150_p3 = scmp.eq.s32.totalorder %s2323_s22, 1 }
   0xa   : > { %s3560_s23 = scalar_select %p3281_p1, 1, 0 }
   0xb   : > { %s3561_s24 = scalar_select %p3285_p2, 1, 0 }
   0xc   : > { %p3291_p4 = por %p3281_p1, %p55_p0  ;;  %p2324_p5 = scmp.ge.s32.totalorder %s3213_s20, 1 }
   0xd   : > { %p3296_p6 = por %p150_p3, %p55_p0  ;;  %p157_p7 = scmp.lt.s32.totalorder %s3213_s20, 3 }
   0xe   : > { %s3562_s25 = scalar_select %p3291_p4, 1, 0 }
   0xf   : > { %s3563_s26 = scalar_select %p3296_p6, 1, 0 }
  0x10   : > { %p3301_p8 = pnand %p2324_p5, %p157_p7  ;;  %s3215_s28 = smov [#allocation5]  }
  0x11   : > { %s169_s29 = sshll.u32 %s3215_s28, 4  ;;  %s33_s5 = sadd.s32 1, %s3209_s19  ;;  %s170_s29 = int_to_ptr.vmem [resolvable:$true] %s169_s29 }
  0x12   : > { %s3564_s27 = scalar_select %p3301_p8, 1, 0 }
  0x13   : > { %p2995_p9 = pneg %p3301_p8  ;;  %s3069_s8 = scalar_lea.hbm %s3552_s1, 76800 }
  0x14   : > { %p3070_p12 = scmp.ne.s32.totalorder %s3552_s1, %s3069_s8  ;;  %p3076_p5 = scmp.lt.u32.totalorder %s3069_s8, %s3552_s1 }
  0x15   : > { %p3310_p11 = pnand %p2995_p9, %p3281_p1 }
  0x17   : > { %p3071_p13 = pneg %p3310_p11 }
  0x19   : > { %p3072_p0 = pnand %p3071_p13, %p3070_p12 }
  0x1b   : > { %p3073_p3 = pneg %p3072_p0 }
  0x1d   : > { %p3078_p7 = pnand %p3076_p5, %p3073_p3 }
  0x1f   : > { %3081 = shalt.err (!%p3078_p7)
}
  0x20   : > { %s3082_s13 = scalar_lea.vmem %s170_s29, 76800  ;;  %p3090_p1 = scmp.lt.s32.totalorder %s170_s29, %s170_s29 }
  0x21   : > { %p3083_p9 = scmp.ne.s32.totalorder %s170_s29, %s3082_s13  ;;  %p3091_p4 = scmp.lt.s32.totalorder %s3082_s13, %s3082_s13 }
  0x23   : > { %p3085_p10 = pnand %p3083_p9, %p3071_p13  ;;  %p3092_p8 = por %p3091_p4, %p3090_p1 }
  0x25   : > { %p3086_p6 = pneg %p3085_p10 }
  0x27   : > { %p3093_p2 = pnand %p3092_p8, %p3086_p6 }
  0x29   : > { %3096 = shalt.err (!%p3093_p2)
}
  0x2a   : > { %s3216_s14 = smov 512   ;;  %s3217_s21 = smov 32  }
  0x2b   : > { %2998 = dma.hbm_to_vmem [thread:$0]  (!%p3310_p11), %s3552_s1, 76800, %s170_s29, [#allocation6], %s3216_s14, %s3216_s14, %s3217_s21  }
  0x2c   : > { %p35_p1 = scmp.ge.s32.totalorder %s33_s5, 2  ;;  %s42_s6 = sadd.s32 1, %s3201_s17 }
  0x2d   : > { %p49_p2 = scmp.ne.s32.totalorder %s3201_s17, %s3197_s16  ;;  %p50_p4 = scmp.eq.s32.totalorder %s3213_s20, 0 }
  0x2e   : > { %s3581_s5 = smov (%p35_p1, %s33_s5), 0  ;;  %p3567_p8 = scmp.ne.s32.totalorder %s3561_s24, 0 }
  0x2f   : > { %p3337_p6 = por %p50_p4, %p49_p2  ;;  %s37_s30 = ssub.s32 %s3209_s19, %s3581_s5 }
  0x30   : > { %p3343_p10 = por %p3567_p8, %p49_p2  ;;  %p3008_p12 = scmp.lt.s32.totalorder %s3213_s20, 2 }
  0x31   : > { %p40_p11 = scmp.eq.s32.totalorder %s37_s30, 0  ;;  %s189_s29 = sand.u32 1, %s3201_s17  }
  0x32   : > { %s2327_s9 = sshll.u32 %s189_s29, 4  ;;  %s2365_s11 = sshll.u32 %s3209_s19, 8 }
  0x33   : > { %s3352_s10 = scalar_select %p40_p11, %s3201_s17, %s42_s6  }
  0x34   : > { %s3358_s14 = scalar_lea.hbm %s3551_s0, %s2365_s11  ;;  %s193_s24 = scalar_lea.vmem [#allocation2], %s2327_s9 }
  0x35   : > { %s203_s21 = sshll.u32 %s193_s24, 4  ;;  %p3364_p13 = pnand %p3008_p12, %p3337_p6  ;;  %s3360_s21 = int_to_ptr.vmem [resolvable:$true] %s203_s21 }
  0x36   : > { %s190_s28 = scalar_lea.sflag [#allocation3], %s189_s29  ;;  %s3097_s6 = scalar_lea.hbm %s3358_s14, 256 }
  0x37   : > { %p3098_p0 = scmp.ne.s32.totalorder %s3358_s14, %s3097_s6  ;;  %p3099_p3 = pneg %p3364_p13 }
  0x38   : > { %s3102_s11 = scalar_lea.hbm %s3551_s0, 512  ;;  %p3103_p9 = scmp.lt.u32.totalorder %s3358_s14, %s3551_s0 }
  0x39   : > { %p3100_p5 = pnand %p3099_p3, %p3098_p0  ;;  %p3104_p1 = scmp.lt.u32.totalorder %s3102_s11, %s3097_s6 }
  0x3a   : > { %p3106_p4 = scmp.lt.u32.totalorder %s3097_s6, %s3358_s14 }
  0x3b   : > { %p3101_p7 = pneg %p3100_p5  ;;  %p3105_p2 = por %p3104_p1, %p3103_p9 }
  0x3d   : > { %p3107_p6 = por %p3106_p4, %p3105_p2 }
  0x3f   : > { %p3108_p8 = pnand %p3107_p6, %p3101_p7 }
  0x41   : > { %3111 = shalt.err (!%p3108_p8)
}
  0x42   : > { %s3112_s29 = scalar_lea.vmem %s3360_s21, 256  ;;  %s3218_s13 = smov [#allocation2]  }
  0x43   : > { %p3113_p12 = scmp.ne.s32.totalorder %s3360_s21, %s3112_s29  ;;  %s3117_s24 = sshll.u32 %s3218_s13, 4  ;;  %s3118_s24 = int_to_ptr.vmem [resolvable:$false] %s3117_s24 }
  0x44   : > { %s3119_s30 = scalar_lea.vmem %s3118_s24, 512  ;;  %p3120_p5 = scmp.lt.s32.totalorder %s3360_s21, %s3118_s24 }
  0x45   : > { %p3115_p11 = pnand %p3113_p12, %p3099_p3  ;;  %p3121_p9 = scmp.lt.s32.totalorder %s3119_s30, %s3112_s29 }
  0x47   : > { %p3116_p0 = pneg %p3115_p11  ;;  %p3122_p1 = por %p3121_p9, %p3120_p5 }
  0x49   : > { %p3123_p2 = pnand %p3122_p1, %p3116_p0 }
  0x4b   : > { %3126 = shalt.err (!%p3123_p2)
}
  0x4c   : > { %3002 = dma.hbm_to_vmem [thread:$0]  (!%p3364_p13), %s3358_s14, 256, %s3360_s21, %s190_s28  }
  0x4d   : > { %p3570_p7 = scmp.ne.s32.totalorder %s3564_s27, 0 }
  0x4e   : > { %s3396_s6 = sand.u32 (!%p3570_p7), 1, %s3197_s16   ;;  %p3571_p3 = scmp.ne.s32.totalorder (!%p3570_p7), %s3562_s25, 0 }
  0x4f   : > { %212 = sbr.rel (%p3570_p7) target bundleno = 1064 (0x428), region = 36  ;;  %s2331_s9 = sshll.u32 (!%p3570_p7), %s3396_s6, 4 }
  0x50   : > { %s215_s11 = scalar_lea.sflag (!%p3570_p7), [#allocation3], %s3396_s6  ;;  %s3400_s7 = scalar_lea.vmem (!%p3570_p7), [#allocation2], %s2331_s9 }
  0x56   : > { %3180 = dma.done.wait (%p3571_p3), %s215_s11, 256  }
  0x57   : > { %3182 = vsyncadd (%p3571_p3), %s215_s11, 4294967040  ;;  %p3572_p13 = scmp.ne.s32.totalorder %s3560_s23, 0 }
  0x59   : > { %3184 = dma.done.wait (%p3572_p13), [#allocation6], 76800  }
  0x5a   : > { %3186 = vsyncadd (%p3572_p13), [#allocation6], 4294890496  ;;  %v251_v0 = vld [vmem:[#allocation5 + $0x8] sm:$0xff]  ;;  %v253_v2 = vld [vmem:[#allocation5 + $0x18] sm:$0xff]  ;;  %vm455_vm0 = vcmask 130048   ;;  %vm1234_vm1 = vcmask 1043456  }
  0x5b   : > { %v255_v1 = vld [vmem:[#allocation5 + $0x28] sm:$0xff]  ;;  %v257_v4 = vld [vmem:[#allocation5 + $0x38] sm:$0xff]  ;;  %v250_v5 = vld [vmem:[#allocation5] sm:$0xff]  ;;  %vm1230_vm2 = vcmask 31744   ;;  %s2333_s29 = sshll.u32 %s3396_s6, 5  ;;  %s2366_s13 = sshll.u32 %s3205_s18, 9 }
  0x5c   : > { %v2367_v3 = vpack.c.bf16 %v255_v1, %v251_v0  ;;  %v254_v6 = vld [vmem:[#allocation5 + $0x20] sm:$0xff]  ;;  %v2467_v7 = vpack.c.bf16 %v257_v4, %v253_v2  ;;  %v252_v9 = vld [vmem:[#allocation5 + $0x10] sm:$0xff]  ;;  %v259_v11 = vld [vmem:[#allocation5 + $0x48] sm:$0xff]  ;;  %s246_s24 = scalar_lea.vmem [#allocation7], %s2333_s29  ;;  %s2212_s18 = scalar_lea.sflag [#allocation4], %s3396_s6 }
  0x5d   : > { %v2369_v8 = vpack.c.bf16 %v254_v6, %v250_v5  ;;  %v256_v10 = vld [vmem:[#allocation5 + $0x30] sm:$0xff]  ;;  %v263_v13 = vld [vmem:[#allocation5 + $0x68] sm:$0xff]  ;;  %v261_v14 = vld [vmem:[#allocation5 + $0x58] sm:$0xff]  ;;  %s2228_s30 = sshll.u32 %s246_s24, 4  ;;  %s3221_s25 = smov [#allocation7]   ;;  %s3503_s30 = int_to_ptr.vmem [resolvable:$true] %s2228_s30 }
  0x5e   : > { %2368 = vmatprep.subr.bf16.mxu0 %v2367_v3  ;;  %v2469_v12 = vpack.c.bf16 %v256_v10, %v252_v9  ;;  %v265_v15 = vld [vmem:[#allocation5 + $0x78] sm:$0xff]  ;;  %2468 = vmatprep.subr.bf16.mxu1 %v2467_v7  ;;  %v2371_v16 = vpack.c.bf16 %v263_v13, %v259_v11  ;;  %v258_v18 = vld [vmem:[#allocation5 + $0x40] sm:$0xff]  ;;  %v260_v20 = vld [vmem:[#allocation5 + $0x50] sm:$0xff]  ;;  %s3127_s23 = scalar_lea.vmem %s3503_s30, 512  ;;  %s3131_s27 = sshll.u32 %s3221_s25, 4  ;;  %s3132_s27 = int_to_ptr.vmem [resolvable:$false] %s3131_s27 }
  0x5f   : > { %2370 = vmatpush1.bf16.msra.mxu0 %v2369_v8  ;;  %v2471_v17 = vpack.c.bf16 %v265_v15, %v261_v14  ;;  %v262_v19 = vld [vmem:[#allocation5 + $0x60] sm:$0xff]  ;;  %v264_v22 = vld [vmem:[#allocation5 + $0x70] sm:$0xff]  ;;  %v267_v23 = vld [vmem:[#allocation5 + $0x88] sm:$0xff]  ;;  %p3128_p4 = scmp.ne.s32.totalorder %s3503_s30, %s3127_s23  ;;  %s3133_s14 = scalar_lea.vmem %s3132_s27, 1024 }
  0x60   : > { %2470 = vmatpush1.bf16.msra.mxu1 %v2469_v12  ;;  %v2373_v21 = vpack.c.bf16 %v262_v19, %v258_v18  ;;  %v271_v24 = vld [vmem:[#allocation5 + $0xa8] sm:$0xff]  ;;  %2372 = vmatprep.subr.bf16.mxu0 %v2371_v16  ;;  %v2473_v25 = vpack.c.bf16 %v264_v22, %v260_v20  ;;  %v269_v27 = vld [vmem:[#allocation5 + $0x98] sm:$0xff]  ;;  %v266_v29 = vld [vmem:[#allocation5 + $0x80] sm:$0xff]  ;;  %p3134_p12 = scmp.lt.s32.totalorder %s3503_s30, %s3132_s27  ;;  %p3135_p11 = scmp.lt.s32.totalorder %s3133_s14, %s3127_s23 }
  0x61   : > { %2472 = vmatprep.subr.bf16.mxu1 %v2471_v17  ;;  %v2375_v26 = vpack.c.bf16 %v271_v24, %v267_v23  ;;  %v273_v28 = vld [vmem:[#allocation5 + $0xb8] sm:$0xff]  ;;  %v270_v31 = vld [vmem:[#allocation5 + $0xa0] sm:$0xff]  ;;  %v268_v32 = vld [vmem:[#allocation5 + $0x90] sm:$0xff]  ;;  %p3129_p6 = pnand %p3128_p4, %p3343_p10 }
  0x62   : > { %v2475_v30 = vpack.c.bf16 %v273_v28, %v269_v27  ;;  %v272_v33 = vld [vmem:[#allocation5 + $0xb0] sm:$0xff]  ;;  %v2377_v34 = vpack.c.bf16 %v270_v31, %v266_v29  ;;  %v275_v35 = vld [vmem:[#allocation5 + $0xc8] sm:$0xff]  ;;  %v277_v37 = vld [vmem:[#allocation5 + $0xd8] sm:$0xff]  ;;  %p3136_p0 = por %p3135_p11, %p3134_p12 }
  0x63   : > { %2374 = vmatpush1.bf16.msra.mxu0 %v2373_v21  ;;  %v279_v36 = vld [vmem:[#allocation5 + $0xe8] sm:$0xff]  ;;  %v2477_v38 = vpack.c.bf16 %v272_v33, %v268_v32  ;;  %v281_v40 = vld [vmem:[#allocation5 + $0xf8] sm:$0xff]  ;;  %v274_v41 = vld [vmem:[#allocation5 + $0xc0] sm:$0xff]  ;;  %p3130_p8 = pneg %p3129_p6 }
  0x64   : > { %2474 = vmatpush1.bf16.msra.mxu1 %v2473_v25  ;;  %2376 = vmatprep.subr.bf16.mxu0 %v2375_v26  ;;  %v2379_v39 = vpack.c.bf16 %v279_v36, %v275_v35  ;;  %v278_v42 = vld [vmem:[#allocation5 + $0xe0] sm:$0xff]  ;;  %v2479_v43 = vpack.c.bf16 %v281_v40, %v277_v37  ;;  %v276_v44 = vld [vmem:[#allocation5 + $0xd0] sm:$0xff]  ;;  %v283_v46 = vld [vmem:[#allocation5 + $0x108] sm:$0xff] }
  0x65   : > { %2476 = vmatprep.subr.bf16.mxu1 %v2475_v30  ;;  %v280_v45 = vld [vmem:[#allocation5 + $0xf0] sm:$0xff]  ;;  %v287_v47 = vld [vmem:[#allocation5 + $0x128] sm:$0xff]  ;;  %v285_v48 = vld [vmem:[#allocation5 + $0x118] sm:$0xff]  ;;  %v2381_v50 = vpack.c.bf16 %v278_v42, %v274_v41  ;;  %p3137_p5 = pnand %p3136_p0, %p3130_p8 }
  0x66   : > { %v289_v49 = vld [vmem:[#allocation5 + $0x138] sm:$0xff]  ;;  %v2481_v51 = vpack.c.bf16 %v280_v45, %v276_v44  ;;  %v2383_v52 = vpack.c.bf16 %v287_v47, %v283_v46  ;;  %v282_v53 = vld [vmem:[#allocation5 + $0x100] sm:$0xff]  ;;  %v284_v55 = vld [vmem:[#allocation5 + $0x110] sm:$0xff] }
  0x67   : > { %2378 = vmatpush1.bf16.msra.mxu0 %v2377_v34  ;;  %v286_v54 = vld [vmem:[#allocation5 + $0x120] sm:$0xff]  ;;  %v2483_v56 = vpack.c.bf16 %v289_v49, %v285_v48  ;;  %v288_v57 = vld [vmem:[#allocation5 + $0x130] sm:$0xff]  ;;  %v291_v58 = vld [vmem:[#allocation5 + $0x148] sm:$0xff] }
  0x68   : > { %2478 = vmatpush1.bf16.msra.mxu1 %v2477_v38  ;;  %2380 = vmatprep.subr.bf16.mxu0 %v2379_v39  ;;  %v295_v59 = vld [vmem:[#allocation5 + $0x168] sm:$0xff]  ;;  %v293_v60 = vld [vmem:[#allocation5 + $0x158] sm:$0xff]  ;;  %v2385_v62 = vpack.c.bf16 %v286_v54, %v282_v53  ;;  %v2485_v63 = vpack.c.bf16 %v288_v57, %v284_v55  ;;  %v290_v1 = vld [vmem:[#allocation5 + $0x140] sm:$0xff] }
  0x69   : > { %2480 = vmatprep.subr.bf16.mxu1 %v2479_v43  ;;  %v297_v61 = vld [vmem:[#allocation5 + $0x178] sm:$0xff]  ;;  %v2387_v0 = vpack.c.bf16 %v295_v59, %v291_v58  ;;  %v294_v2 = vld [vmem:[#allocation5 + $0x160] sm:$0xff]  ;;  %v292_v3 = vld [vmem:[#allocation5 + $0x150] sm:$0xff] }
  0x6a   : > { %v2487_v4 = vpack.c.bf16 %v297_v61, %v293_v60  ;;  %v296_v5 = vld [vmem:[#allocation5 + $0x170] sm:$0xff]  ;;  %v299_v6 = vld [vmem:[#allocation5 + $0x188] sm:$0xff]  ;;  %v301_v8 = vld [vmem:[#allocation5 + $0x198] sm:$0xff]  ;;  %v2389_v10 = vpack.c.bf16 %v294_v2, %v290_v1 }
  0x6b   : > { %2382 = vmatpush1.bf16.msra.mxu0 %v2381_v50  ;;  %v303_v7 = vld [vmem:[#allocation5 + $0x1a8] sm:$0xff]  ;;  %v305_v9 = vld [vmem:[#allocation5 + $0x1b8] sm:$0xff]  ;;  %v2489_v11 = vpack.c.bf16 %v296_v5, %v292_v3  ;;  %v298_v13 = vld [vmem:[#allocation5 + $0x180] sm:$0xff] }
  0x6c   : > { %2482 = vmatpush1.bf16.msra.mxu1 %v2481_v51  ;;  %2384 = vmatprep.subr.bf16.mxu0 %v2383_v52  ;;  %v2391_v12 = vpack.c.bf16 %v303_v7, %v299_v6  ;;  %v302_v14 = vld [vmem:[#allocation5 + $0x1a0] sm:$0xff]  ;;  %v300_v15 = vld [vmem:[#allocation5 + $0x190] sm:$0xff]  ;;  %v2491_v16 = vpack.c.bf16 %v305_v9, %v301_v8  ;;  %v307_v18 = vld [vmem:[#allocation5 + $0x1c8] sm:$0xff] }
  0x6d   : > { %2484 = vmatprep.subr.bf16.mxu1 %v2483_v56  ;;  %v304_v17 = vld [vmem:[#allocation5 + $0x1b0] sm:$0xff]  ;;  %v311_v19 = vld [vmem:[#allocation5 + $0x1e8] sm:$0xff]  ;;  %v309_v20 = vld [vmem:[#allocation5 + $0x1d8] sm:$0xff]  ;;  %v2393_v22 = vpack.c.bf16 %v302_v14, %v298_v13 }
  0x6e   : > { %v313_v21 = vld [vmem:[#allocation5 + $0x1f8] sm:$0xff]  ;;  %v2493_v23 = vpack.c.bf16 %v304_v17, %v300_v15  ;;  %v2395_v24 = vpack.c.bf16 %v311_v19, %v307_v18  ;;  %v306_v25 = vld [vmem:[#allocation5 + $0x1c0] sm:$0xff]  ;;  %v308_v27 = vld [vmem:[#allocation5 + $0x1d0] sm:$0xff] }
  0x6f   : > { %2386 = vmatpush1.bf16.msra.mxu0 %v2385_v62  ;;  %v310_v26 = vld [vmem:[#allocation5 + $0x1e0] sm:$0xff]  ;;  %v2495_v28 = vpack.c.bf16 %v313_v21, %v309_v20  ;;  %v312_v29 = vld [vmem:[#allocation5 + $0x1f0] sm:$0xff]  ;;  %v315_v30 = vld [vmem:[#allocation5 + $0x208] sm:$0xff] }
  0x70   : > { %2486 = vmatpush1.bf16.msra.mxu1 %v2485_v63  ;;  %2388 = vmatprep.subr.bf16.mxu0 %v2387_v0  ;;  %v319_v31 = vld [vmem:[#allocation5 + $0x228] sm:$0xff]  ;;  %v317_v32 = vld [vmem:[#allocation5 + $0x218] sm:$0xff]  ;;  %v2397_v34 = vpack.c.bf16 %v310_v26, %v306_v25  ;;  %v2497_v35 = vpack.c.bf16 %v312_v29, %v308_v27  ;;  %v314_v37 = vld [vmem:[#allocation5 + $0x200] sm:$0xff] }
  0x71   : > { %2488 = vmatprep.subr.bf16.mxu1 %v2487_v4  ;;  %v321_v33 = vld [vmem:[#allocation5 + $0x238] sm:$0xff]  ;;  %v2399_v36 = vpack.c.bf16 %v319_v31, %v315_v30  ;;  %v318_v38 = vld [vmem:[#allocation5 + $0x220] sm:$0xff]  ;;  %v316_v39 = vld [vmem:[#allocation5 + $0x210] sm:$0xff] }
  0x72   : > { %v2499_v40 = vpack.c.bf16 %v321_v33, %v317_v32  ;;  %v320_v41 = vld [vmem:[#allocation5 + $0x230] sm:$0xff]  ;;  %v323_v42 = vld [vmem:[#allocation5 + $0x248] sm:$0xff]  ;;  %v325_v44 = vld [vmem:[#allocation5 + $0x258] sm:$0xff]  ;;  %v2401_v46 = vpack.c.bf16 %v318_v38, %v314_v37 }
  0x73   : > { %2390 = vmatpush1.bf16.msra.mxu0 %v2389_v10  ;;  %v327_v43 = vld [vmem:[#allocation5 + $0x268] sm:$0xff]  ;;  %v329_v45 = vld [vmem:[#allocation5 + $0x278] sm:$0xff]  ;;  %v2501_v47 = vpack.c.bf16 %v320_v41, %v316_v39  ;;  %v322_v49 = vld [vmem:[#allocation5 + $0x240] sm:$0xff] }
  0x74   : > { %2490 = vmatpush1.bf16.msra.mxu1 %v2489_v11  ;;  %2392 = vmatprep.subr.bf16.mxu0 %v2391_v12  ;;  %v2403_v48 = vpack.c.bf16 %v327_v43, %v323_v42  ;;  %v326_v50 = vld [vmem:[#allocation5 + $0x260] sm:$0xff]  ;;  %v324_v51 = vld [vmem:[#allocation5 + $0x250] sm:$0xff]  ;;  %v2503_v52 = vpack.c.bf16 %v329_v45, %v325_v44  ;;  %v331_v54 = vld [vmem:[#allocation5 + $0x288] sm:$0xff] }
  0x75   : > { %2492 = vmatprep.subr.bf16.mxu1 %v2491_v16  ;;  %v328_v53 = vld [vmem:[#allocation5 + $0x270] sm:$0xff]  ;;  %v335_v55 = vld [vmem:[#allocation5 + $0x2a8] sm:$0xff]  ;;  %v333_v56 = vld [vmem:[#allocation5 + $0x298] sm:$0xff]  ;;  %v2405_v58 = vpack.c.bf16 %v326_v50, %v322_v49 }
  0x76   : > { %v337_v57 = vld [vmem:[#allocation5 + $0x2b8] sm:$0xff]  ;;  %v2505_v59 = vpack.c.bf16 %v328_v53, %v324_v51  ;;  %v2407_v60 = vpack.c.bf16 %v335_v55, %v331_v54  ;;  %v330_v61 = vld [vmem:[#allocation5 + $0x280] sm:$0xff]  ;;  %v332_v63 = vld [vmem:[#allocation5 + $0x290] sm:$0xff] }
  0x77   : > { %2394 = vmatpush1.bf16.msra.mxu0 %v2393_v22  ;;  %v334_v62 = vld [vmem:[#allocation5 + $0x2a0] sm:$0xff]  ;;  %v2507_v0 = vpack.c.bf16 %v337_v57, %v333_v56  ;;  %v336_v1 = vld [vmem:[#allocation5 + $0x2b0] sm:$0xff]  ;;  %v339_v2 = vld [vmem:[#allocation5 + $0x2c8] sm:$0xff] }
  0x78   : > { %2494 = vmatpush1.bf16.msra.mxu1 %v2493_v23  ;;  %2396 = vmatprep.subr.bf16.mxu0 %v2395_v24  ;;  %v343_v3 = vld [vmem:[#allocation5 + $0x2e8] sm:$0xff]  ;;  %v341_v4 = vld [vmem:[#allocation5 + $0x2d8] sm:$0xff]  ;;  %v2409_v6 = vpack.c.bf16 %v334_v62, %v330_v61  ;;  %v338_v7 = vld [vmem:[#allocation5 + $0x2c0] sm:$0xff]  ;;  %v2509_v8 = vpack.c.bf16 %v336_v1, %v332_v63 }
  0x79   : > { %2496 = vmatprep.subr.bf16.mxu1 %v2495_v28  ;;  %v345_v5 = vld [vmem:[#allocation5 + $0x2f8] sm:$0xff]  ;;  %v2411_v9 = vpack.c.bf16 %v343_v3, %v339_v2  ;;  %v342_v10 = vld [vmem:[#allocation5 + $0x2e0] sm:$0xff]  ;;  %v340_v11 = vld [vmem:[#allocation5 + $0x2d0] sm:$0xff] }
  0x7a   : > { %v344_v12 = vld [vmem:[#allocation5 + $0x2f0] sm:$0xff]  ;;  %v2511_v13 = vpack.c.bf16 %v345_v5, %v341_v4  ;;  %v347_v14 = vld [vmem:[#allocation5 + $0x308] sm:$0xff]  ;;  %v349_v17 = vld [vmem:[#allocation5 + $0x318] sm:$0xff]  ;;  %v2413_v20 = vpack.c.bf16 %v342_v10, %v338_v7 }
  0x7b   : > { %2398 = vmatpush1.bf16.msra.mxu0 %v2397_v34  ;;  %v351_v15 = vld [vmem:[#allocation5 + $0x328] sm:$0xff]  ;;  %v3411_v16 = vld [vmem:[%s3400_s7] sm:$0xff]  ;;  %v353_v18 = vld [vmem:[#allocation5 + $0x338] sm:$0xff]  ;;  %v2513_v21 = vpack.c.bf16 %v344_v12, %v340_v11 }
  0x7c   : > { %2498 = vmatpush1.bf16.msra.mxu1 %v2497_v35  ;;  %2400 = vmatprep.subr.bf16.mxu0 %v2399_v36  ;;  %v3415_v19 = vcombine.high %v3411_v16, %v3411_v16  ;;  %v2415_v22 = vpack.c.bf16 %v351_v15, %v347_v14  ;;  %v346_v23 = vld [vmem:[#allocation5 + $0x300] sm:$0xff]  ;;  %v348_v25 = vld [vmem:[#allocation5 + $0x310] sm:$0xff]  ;;  %v2515_v26 = vpack.c.bf16 %v353_v18, %v349_v17  ;;  %v355_v28 = vld [vmem:[#allocation5 + $0x348] sm:$0xff] }
  0x7d   : > { %2500 = vmatprep.subr.bf16.mxu1 %v2499_v40  ;;  %v350_v24 = vld [vmem:[#allocation5 + $0x320] sm:$0xff]  ;;  %v352_v27 = vld [vmem:[#allocation5 + $0x330] sm:$0xff]  ;;  %v359_v29 = vld [vmem:[#allocation5 + $0x368] sm:$0xff] }
  0x7e   : > { %522 = vmatprep.mubr.f32.mxu0 %v3415_v19  ;;  %v357_v30 = vld [vmem:[#allocation5 + $0x358] sm:$0xff]  ;;  %664 = vmatprep.mubr.f32.mxu1 %v3415_v19  ;;  %v2417_v32 = vpack.c.bf16 %v350_v24, %v346_v23  ;;  %v2517_v33 = vpack.c.bf16 %v352_v27, %v348_v25  ;;  %v2419_v34 = vpack.c.bf16 %v359_v29, %v355_v28  ;;  %v354_v35 = vld [vmem:[#allocation5 + $0x340] sm:$0xff]  ;;  %v356_v37 = vld [vmem:[#allocation5 + $0x350] sm:$0xff] }
  0x7f   : > { %2402 = vmatpush1.bf16.msra.mxu0 %v2401_v46  ;;  %v361_v31 = vld [vmem:[#allocation5 + $0x378] sm:$0xff]  ;;  %v358_v36 = vld [vmem:[#allocation5 + $0x360] sm:$0xff]  ;;  %v360_v39 = vld [vmem:[#allocation5 + $0x370] sm:$0xff] }
  0x80   : > { %2502 = vmatpush1.bf16.msra.mxu1 %v2501_v47  ;;  %2404 = vmatprep.subr.bf16.mxu0 %v2403_v48  ;;  %v2519_v38 = vpack.c.bf16 %v361_v31, %v357_v30  ;;  %v363_v40 = vld [vmem:[#allocation5 + $0x388] sm:$0xff]  ;;  %v365_v42 = vld [vmem:[#allocation5 + $0x398] sm:$0xff]  ;;  %v2421_v44 = vpack.c.bf16 %v358_v36, %v354_v35  ;;  %v2521_v45 = vpack.c.bf16 %v360_v39, %v356_v37  ;;  %v362_v47 = vld [vmem:[#allocation5 + $0x380] sm:$0xff] }
  0x81   : > { %2504 = vmatprep.subr.bf16.mxu1 %v2503_v52  ;;  %v367_v41 = vld [vmem:[#allocation5 + $0x3a8] sm:$0xff]  ;;  %v369_v43 = vld [vmem:[#allocation5 + $0x3b8] sm:$0xff]  ;;  %v366_v48 = vld [vmem:[#allocation5 + $0x3a0] sm:$0xff] }
  0x82   : > { %v2423_v46 = vpack.c.bf16 %v367_v41, %v363_v40  ;;  %v364_v49 = vld [vmem:[#allocation5 + $0x390] sm:$0xff]  ;;  %v2523_v50 = vpack.c.bf16 %v369_v43, %v365_v42  ;;  %v371_v52 = vld [vmem:[#allocation5 + $0x3c8] sm:$0xff]  ;;  %v373_v54 = vld [vmem:[#allocation5 + $0x3d8] sm:$0xff]  ;;  %v2425_v56 = vpack.c.bf16 %v366_v48, %v362_v47 }
  0x83   : > { %2406 = vmatpush1.bf16.msra.mxu0 %v2405_v58  ;;  %v368_v51 = vld [vmem:[#allocation5 + $0x3b0] sm:$0xff]  ;;  %v375_v53 = vld [vmem:[#allocation5 + $0x3e8] sm:$0xff]  ;;  %v377_v55 = vld [vmem:[#allocation5 + $0x3f8] sm:$0xff] }
  0x84   : > { %2506 = vmatpush1.bf16.msra.mxu1 %v2505_v59  ;;  %2408 = vmatprep.subr.bf16.mxu0 %v2407_v60  ;;  %v2525_v57 = vpack.c.bf16 %v368_v51, %v364_v49  ;;  %v2427_v58 = vpack.c.bf16 %v375_v53, %v371_v52  ;;  %v370_v59 = vld [vmem:[#allocation5 + $0x3c0] sm:$0xff]  ;;  %v372_v61 = vld [vmem:[#allocation5 + $0x3d0] sm:$0xff]  ;;  %v2527_v62 = vpack.c.bf16 %v377_v55, %v373_v54  ;;  %v383_v1 = vld [vmem:[#allocation5 + $0x428] sm:$0xff] }
  0x85   : > { %2508 = vmatprep.subr.bf16.mxu1 %v2507_v0  ;;  %v374_v60 = vld [vmem:[#allocation5 + $0x3e0] sm:$0xff]  ;;  %v376_v63 = vld [vmem:[#allocation5 + $0x3f0] sm:$0xff]  ;;  %v379_v0 = vld [vmem:[#allocation5 + $0x408] sm:$0xff] }
  0x86   : > { %v381_v2 = vld [vmem:[#allocation5 + $0x418] sm:$0xff]  ;;  %v2429_v4 = vpack.c.bf16 %v374_v60, %v370_v59  ;;  %v2529_v5 = vpack.c.bf16 %v376_v63, %v372_v61  ;;  %v378_v7 = vld [vmem:[#allocation5 + $0x400] sm:$0xff]  ;;  %v384_v11 = vld [vmem:[#allocation5 + $0x430] sm:$0xff] }
  0x87   : > { %2410 = vmatpush1.bf16.msra.mxu0 %v2409_v6  ;;  %v385_v3 = vld [vmem:[#allocation5 + $0x438] sm:$0xff]  ;;  %v2431_v6 = vpack.c.bf16 %v383_v1, %v379_v0  ;;  %v387_v12 = vld [vmem:[#allocation5 + $0x448] sm:$0xff]  ;;  %v388_v23 = vld [vmem:[#allocation5 + $0x450] sm:$0xff] }
  0x88   : > { %2510 = vmatpush1.bf16.msra.mxu1 %v2509_v8  ;;  %2412 = vmatprep.subr.bf16.mxu0 %v2411_v9  ;;  %v382_v8 = vld [vmem:[#allocation5 + $0x420] sm:$0xff]  ;;  %v380_v9 = vld [vmem:[#allocation5 + $0x410] sm:$0xff]  ;;  %v2531_v10 = vpack.c.bf16 %v385_v3, %v381_v2  ;;  %v389_v14 = vld [vmem:[#allocation5 + $0x458] sm:$0xff] }
  0x89   : > { %2512 = vmatprep.subr.bf16.mxu1 %v2511_v13  ;;  %v391_v13 = vld [vmem:[#allocation5 + $0x468] sm:$0xff]  ;;  %v393_v15 = vld [vmem:[#allocation5 + $0x478] sm:$0xff]  ;;  %v2433_v17 = vpack.c.bf16 %v382_v8, %v378_v7  ;;  %v2533_v18 = vpack.c.bf16 %v384_v11, %v380_v9  ;;  %v392_v25 = vld [vmem:[#allocation5 + $0x470] sm:$0xff] }
  0x8a   : > { %v2535_v24 = vpack.c.bf16 %v393_v15, %v389_v14  ;;  %v399_v27 = vld [vmem:[#allocation5 + $0x4a8] sm:$0xff]  ;;  %v397_v28 = vld [vmem:[#allocation5 + $0x498] sm:$0xff]  ;;  %v394_v35 = vld [vmem:[#allocation5 + $0x480] sm:$0xff] }
  0x8b   : > { %2414 = vmatpush1.bf16.msra.mxu0 %v2413_v20  ;;  %v2435_v20 = vpack.c.bf16 %v391_v13, %v387_v12  ;;  %v401_v29 = vld [vmem:[#allocation5 + $0x4b8] sm:$0xff]  ;;  %v398_v36 = vld [vmem:[#allocation5 + $0x4a0] sm:$0xff]  ;;  %v396_v37 = vld [vmem:[#allocation5 + $0x490] sm:$0xff] }
  0x8c   : > { %2514 = vmatpush1.bf16.msra.mxu1 %v2513_v21  ;;  %2416 = vmatprep.subr.bf16.mxu0 %v2415_v22  ;;  %v386_v21 = vld [vmem:[#allocation5 + $0x440] sm:$0xff]  ;;  %v3421_v30 = vld [vmem:[%s3400_s7 + $0x8] sm:$0xff]  ;;  %v400_v39 = vld [vmem:[#allocation5 + $0x4b0] sm:$0xff] }
  0x8d   : > { %2516 = vmatprep.subr.bf16.mxu1 %v2515_v26  ;;  %v390_v22 = vld [vmem:[#allocation5 + $0x460] sm:$0xff]  ;;  %v395_v26 = vld [vmem:[#allocation5 + $0x488] sm:$0xff]  ;;  %v405_v42 = vld [vmem:[#allocation5 + $0x4d8] sm:$0xff] }
  0x8e   : > { %v2437_v31 = vpack.c.bf16 %v390_v22, %v386_v21  ;;  %v403_v40 = vld [vmem:[#allocation5 + $0x4c8] sm:$0xff]  ;;  %v409_v43 = vld [vmem:[#allocation5 + $0x4f8] sm:$0xff]  ;;  %v402_v47 = vld [vmem:[#allocation5 + $0x4c0] sm:$0xff] }
  0x8f   : > { %2418 = vmatpush1.bf16.msra.mxu0 %v2417_v32  ;;  %v3426_v32 = vcombine.high %v3421_v30, %v3421_v30  ;;  %v407_v41 = vld [vmem:[#allocation5 + $0x4e8] sm:$0xff]  ;;  %v406_v48 = vld [vmem:[#allocation5 + $0x4e0] sm:$0xff]  ;;  %v404_v49 = vld [vmem:[#allocation5 + $0x4d0] sm:$0xff] }
  0x90   : > { %2518 = vmatpush1.bf16.msra.mxu1 %v2517_v33  ;;  %2420 = vmatprep.subr.bf16.mxu0 %v2419_v34  ;;  %v2537_v33 = vpack.c.bf16 %v392_v25, %v388_v23  ;;  %v2439_v34 = vpack.c.bf16 %v399_v27, %v395_v26  ;;  %v408_v51 = vld [vmem:[#allocation5 + $0x4f0] sm:$0xff]  ;;  %v411_v52 = vld [vmem:[#allocation5 + $0x508] sm:$0xff]  ;;  %v413_v54 = vld [vmem:[#allocation5 + $0x518] sm:$0xff] }
  0x91   : > { %2520 = vmatprep.subr.bf16.mxu1 %v2519_v38  ;;  %v2539_v38 = vpack.c.bf16 %v401_v29, %v397_v28  ;;  %v415_v53 = vld [vmem:[#allocation5 + $0x528] sm:$0xff]  ;;  %v417_v55 = vld [vmem:[#allocation5 + $0x538] sm:$0xff]  ;;  %v410_v59 = vld [vmem:[#allocation5 + $0x500] sm:$0xff] }
  0x92   : > { %v414_v60 = vld [vmem:[#allocation5 + $0x520] sm:$0xff]  ;;  %v412_v61 = vld [vmem:[#allocation5 + $0x510] sm:$0xff]  ;;  %v419_v0 = vld [vmem:[#allocation5 + $0x548] sm:$0xff] }
  0x93   : > { %2422 = vmatpush1.bf16.msra.mxu0 %v2421_v44  ;;  %v2441_v44 = vpack.c.bf16 %v398_v36, %v394_v35  ;;  %v416_v63 = vld [vmem:[#allocation5 + $0x530] sm:$0xff]  ;;  %v423_v1 = vld [vmem:[#allocation5 + $0x568] sm:$0xff]  ;;  %v421_v2 = vld [vmem:[#allocation5 + $0x558] sm:$0xff] }
  0x94   : > { %2522 = vmatpush1.bf16.msra.mxu1 %v2521_v45  ;;  %2424 = vmatprep.subr.bf16.mxu0 %v2423_v46  ;;  %v2541_v45 = vpack.c.bf16 %v400_v39, %v396_v37  ;;  %v2443_v46 = vpack.c.bf16 %v407_v41, %v403_v40  ;;  %v425_v3 = vld [vmem:[#allocation5 + $0x578] sm:$0xff]  ;;  %v418_v7 = vld [vmem:[#allocation5 + $0x540] sm:$0xff]  ;;  %v420_v9 = vld [vmem:[#allocation5 + $0x550] sm:$0xff] }
  0x95   : > { %2524 = vmatprep.subr.bf16.mxu1 %v2523_v50  ;;  %v2543_v50 = vpack.c.bf16 %v409_v43, %v405_v42  ;;  %v422_v8 = vld [vmem:[#allocation5 + $0x560] sm:$0xff]  ;;  %v424_v11 = vld [vmem:[#allocation5 + $0x570] sm:$0xff]  ;;  %v427_v12 = vld [vmem:[#allocation5 + $0x588] sm:$0xff] }
  0x96   : > { %v431_v13 = vld [vmem:[#allocation5 + $0x5a8] sm:$0xff]  ;;  %v429_v14 = vld [vmem:[#allocation5 + $0x598] sm:$0xff]  ;;  %v426_v21 = vld [vmem:[#allocation5 + $0x580] sm:$0xff] }
  0x97   : > { %2426 = vmatpush1.bf16.msra.mxu0 %v2425_v56  ;;  %v2445_v56 = vpack.c.bf16 %v406_v48, %v402_v47  ;;  %v433_v15 = vld [vmem:[#allocation5 + $0x5b8] sm:$0xff]  ;;  %v430_v22 = vld [vmem:[#allocation5 + $0x5a0] sm:$0xff]  ;;  %v428_v23 = vld [vmem:[#allocation5 + $0x590] sm:$0xff] }
  0x98   : > { %2526 = vmatpush1.bf16.msra.mxu1 %v2525_v57  ;;  %2428 = vmatprep.subr.bf16.mxu0 %v2427_v58  ;;  %v2545_v57 = vpack.c.bf16 %v408_v51, %v404_v49  ;;  %v2447_v58 = vpack.c.bf16 %v415_v53, %v411_v52  ;;  %v432_v25 = vld [vmem:[#allocation5 + $0x5b0] sm:$0xff]  ;;  %v435_v26 = vld [vmem:[#allocation5 + $0x5c8] sm:$0xff]  ;;  %v437_v28 = vld [vmem:[#allocation5 + $0x5d8] sm:$0xff] }
  0x99   : > { %2528 = vmatprep.subr.bf16.mxu1 %v2527_v62  ;;  %v2547_v62 = vpack.c.bf16 %v417_v55, %v413_v54  ;;  %v439_v27 = vld [vmem:[#allocation5 + $0x5e8] sm:$0xff]  ;;  %v441_v29 = vld [vmem:[#allocation5 + $0x5f8] sm:$0xff]  ;;  %v434_v35 = vld [vmem:[#allocation5 + $0x5c0] sm:$0xff] }
  0x9a   : > { %v438_v36 = vld [vmem:[#allocation5 + $0x5e0] sm:$0xff]  ;;  %v436_v37 = vld [vmem:[#allocation5 + $0x5d0] sm:$0xff]  ;;  %v443_v40 = vld [vmem:[#allocation5 + $0x608] sm:$0xff] }
  0x9b   : > { %2430 = vmatpush1.bf16.msra.mxu0 %v2429_v4  ;;  %v2449_v4 = vpack.c.bf16 %v414_v60, %v410_v59  ;;  %v440_v39 = vld [vmem:[#allocation5 + $0x5f0] sm:$0xff]  ;;  %v447_v41 = vld [vmem:[#allocation5 + $0x628] sm:$0xff]  ;;  %v445_v42 = vld [vmem:[#allocation5 + $0x618] sm:$0xff] }
  0x9c   : > { %2530 = vmatpush1.bf16.msra.mxu1 %v2529_v5  ;;  %2432 = vmatprep.subr.bf16.mxu0 %v2431_v6  ;;  %v2549_v5 = vpack.c.bf16 %v416_v63, %v412_v61  ;;  %v2451_v6 = vpack.c.bf16 %v423_v1, %v419_v0  ;;  %v449_v43 = vld [vmem:[#allocation5 + $0x638] sm:$0xff]  ;;  %v442_v47 = vld [vmem:[#allocation5 + $0x600] sm:$0xff]  ;;  %v444_v49 = vld [vmem:[#allocation5 + $0x610] sm:$0xff] }
  0x9d   : > { %2532 = vmatprep.subr.bf16.mxu1 %v2531_v10  ;;  %v2551_v10 = vpack.c.bf16 %v425_v3, %v421_v2  ;;  %v446_v48 = vld [vmem:[#allocation5 + $0x620] sm:$0xff]  ;;  %v448_v51 = vld [vmem:[#allocation5 + $0x630] sm:$0xff]  ;;  %v745_v52 = vld [vmem:[#allocation5 + $0x648] sm:$0xff] }
  0x9e   : > { %523 = vmatmul.mubr.f32.vlgmr.msra.gmra.mrb[0].mxu0 %v3411_v16  ;;  %v749_v53 = vld [vmem:[#allocation5 + $0x668] sm:$0xff]  ;;  %v747_v54 = vld [vmem:[#allocation5 + $0x658] sm:$0xff]  ;;  %v744_v59 = vld [vmem:[#allocation5 + $0x640] sm:$0xff] }
  0x9f   : > { %2434 = vmatpush1.bf16.msra.mxu0 %v2433_v17  ;;  %665 = vmatmul.mubr.f32.vlgmr.msra.gmra.mrb[0].mxu1 %v3411_v16  ;;  %v2453_v17 = vpack.c.bf16 %v422_v8, %v418_v7  ;;  %v751_v55 = vld [vmem:[#allocation5 + $0x678] sm:$0xff]  ;;  %v748_v60 = vld [vmem:[#allocation5 + $0x660] sm:$0xff]  ;;  %v746_v61 = vld [vmem:[#allocation5 + $0x650] sm:$0xff] }
  0xa0   : > { %2534 = vmatpush1.bf16.msra.mxu1 %v2533_v18  ;;  %2436 = vmatprep.subr.bf16.mxu0 %v2435_v20  ;;  %v2553_v18 = vpack.c.bf16 %v424_v11, %v420_v9  ;;  %v2455_v20 = vpack.c.bf16 %v431_v13, %v427_v12  ;;  %v750_v63 = vld [vmem:[#allocation5 + $0x670] sm:$0xff]  ;;  %v753_v0 = vld [vmem:[#allocation5 + $0x688] sm:$0xff]  ;;  %v755_v2 = vld [vmem:[#allocation5 + $0x698] sm:$0xff] }
  0xa1   : > { %2536 = vmatprep.subr.bf16.mxu1 %v2535_v24  ;;  %2334 = vmatprep.mubr.msk.f32.mxu0 %vm455_vm0, %v3426_v32  ;;  %v2555_v24 = vpack.c.bf16 %v433_v15, %v429_v14  ;;  %v757_v1 = vld [vmem:[#allocation5 + $0x6a8] sm:$0xff]  ;;  %v759_v3 = vld [vmem:[#allocation5 + $0x6b8] sm:$0xff]  ;;  %v752_v7 = vld [vmem:[#allocation5 + $0x680] sm:$0xff] }
  0xa2   : > { %2335 = vmatprep.mubr.msk.f32.mxu1 %vm455_vm0, %v3426_v32  ;;  %v756_v8 = vld [vmem:[#allocation5 + $0x6a0] sm:$0xff]  ;;  %v754_v9 = vld [vmem:[#allocation5 + $0x690] sm:$0xff]  ;;  %v761_v12 = vld [vmem:[#allocation5 + $0x6c8] sm:$0xff] }
  0xa3   : > { %2438 = vmatpush1.bf16.msra.mxu0 %v2437_v31  ;;  %v2457_v31 = vpack.c.bf16 %v430_v22, %v426_v21  ;;  %v758_v11 = vld [vmem:[#allocation5 + $0x6b0] sm:$0xff]  ;;  %v765_v13 = vld [vmem:[#allocation5 + $0x6e8] sm:$0xff]  ;;  %v763_v14 = vld [vmem:[#allocation5 + $0x6d8] sm:$0xff] }
  0xa4   : > { %2538 = vmatpush1.bf16.msra.mxu1 %v2537_v33  ;;  %2440 = vmatprep.subr.bf16.mxu0 %v2439_v34  ;;  %v2557_v33 = vpack.c.bf16 %v432_v25, %v428_v23  ;;  %v2459_v34 = vpack.c.bf16 %v439_v27, %v435_v26  ;;  %v767_v15 = vld [vmem:[#allocation5 + $0x6f8] sm:$0xff]  ;;  %v760_v21 = vld [vmem:[#allocation5 + $0x6c0] sm:$0xff]  ;;  %v762_v23 = vld [vmem:[#allocation5 + $0x6d0] sm:$0xff] }
  0xa5   : > { %2540 = vmatprep.subr.bf16.mxu1 %v2539_v38  ;;  %v2559_v38 = vpack.c.bf16 %v441_v29, %v437_v28  ;;  %v764_v22 = vld [vmem:[#allocation5 + $0x6e0] sm:$0xff]  ;;  %v766_v25 = vld [vmem:[#allocation5 + $0x6f0] sm:$0xff]  ;;  %v769_v26 = vld [vmem:[#allocation5 + $0x708] sm:$0xff] }
  0xa6   : > { %v773_v27 = vld [vmem:[#allocation5 + $0x728] sm:$0xff]  ;;  %v771_v28 = vld [vmem:[#allocation5 + $0x718] sm:$0xff] }
  0xa7   : > { %2442 = vmatpush1.bf16.msra.mxu0 %v2441_v44  ;;  %v2461_v44 = vpack.c.bf16 %v438_v36, %v434_v35  ;;  %v775_v29 = vld [vmem:[#allocation5 + $0x738] sm:$0xff]  ;;  %v772_v35 = vld [vmem:[#allocation5 + $0x720] sm:$0xff]  ;;  %v770_v36 = vld [vmem:[#allocation5 + $0x710] sm:$0xff] }
  0xa8   : > { %2542 = vmatpush1.bf16.msra.mxu1 %v2541_v45  ;;  %2444 = vmatprep.subr.bf16.mxu0 %v2443_v46  ;;  %v2561_v45 = vpack.c.bf16 %v440_v39, %v436_v37  ;;  %v2463_v46 = vpack.c.bf16 %v447_v41, %v443_v40  ;;  %v2679_v37 = vpack.c.bf16 %v775_v29, %v771_v28  ;;  %v777_v39 = vld [vmem:[#allocation5 + $0x748] sm:$0xff]  ;;  %v779_v41 = vld [vmem:[#allocation5 + $0x758] sm:$0xff] }
  0xa9   : > { %2544 = vmatprep.subr.bf16.mxu1 %v2543_v50  ;;  %v2563_v50 = vpack.c.bf16 %v449_v43, %v445_v42  ;;  %v781_v40 = vld [vmem:[#allocation5 + $0x768] sm:$0xff]  ;;  %v783_v42 = vld [vmem:[#allocation5 + $0x778] sm:$0xff] }
  0xaa   : > { %v815_v28 = vld [vmem:[#allocation5 + $0x878] sm:$0xff] }
  0xab   : > { %2446 = vmatpush1.bf16.msra.mxu0 %v2445_v56  ;;  %v2465_v56 = vpack.c.bf16 %v446_v48, %v442_v47  ;;  %v780_v47 = vld [vmem:[#allocation5 + $0x760] sm:$0xff]  ;;  %v778_v48 = vld [vmem:[#allocation5 + $0x750] sm:$0xff] }
  0xac   : > { %2546 = vmatpush1.bf16.msra.mxu1 %v2545_v57  ;;  %2448 = vmatprep.subr.bf16.mxu0 %v2447_v58  ;;  %v2565_v57 = vpack.c.bf16 %v448_v51, %v444_v49  ;;  %v2567_v58 = vpack.c.bf16 %v749_v53, %v745_v52  ;;  %v2683_v49 = vpack.c.bf16 %v783_v42, %v779_v41  ;;  %v785_v51 = vld [vmem:[#allocation5 + $0x788] sm:$0xff]  ;;  %v787_v53 = vld [vmem:[#allocation5 + $0x798] sm:$0xff] }
  0xad   : > { %2548 = vmatprep.subr.bf16.mxu1 %v2547_v62  ;;  %v2667_v62 = vpack.c.bf16 %v751_v55, %v747_v54  ;;  %v789_v52 = vld [vmem:[#allocation5 + $0x7a8] sm:$0xff]  ;;  %v791_v54 = vld [vmem:[#allocation5 + $0x7b8] sm:$0xff] }
  0xae   : > { %v823_v41 = vld [vmem:[#allocation5 + $0x8b8] sm:$0xff] }
  0xaf   : > { %2450 = vmatpush1.bf16.msra.mxu0 %v2449_v4  ;;  %v2569_v4 = vpack.c.bf16 %v748_v60, %v744_v59  ;;  %v788_v59 = vld [vmem:[#allocation5 + $0x7a0] sm:$0xff]  ;;  %v786_v60 = vld [vmem:[#allocation5 + $0x790] sm:$0xff] }
  0xb0   : > { %2550 = vmatpush1.bf16.msra.mxu1 %v2549_v5  ;;  %2452 = vmatprep.subr.bf16.mxu0 %v2451_v6  ;;  %v2669_v5 = vpack.c.bf16 %v750_v63, %v746_v61  ;;  %v2571_v6 = vpack.c.bf16 %v757_v1, %v753_v0  ;;  %v2687_v61 = vpack.c.bf16 %v791_v54, %v787_v53  ;;  %v793_v63 = vld [vmem:[#allocation5 + $0x7c8] sm:$0xff]  ;;  %v795_v1 = vld [vmem:[#allocation5 + $0x7d8] sm:$0xff] }
  0xb1   : > { %2552 = vmatprep.subr.bf16.mxu1 %v2551_v10  ;;  %v2671_v10 = vpack.c.bf16 %v759_v3, %v755_v2  ;;  %v797_v0 = vld [vmem:[#allocation5 + $0x7e8] sm:$0xff]  ;;  %v799_v2 = vld [vmem:[#allocation5 + $0x7f8] sm:$0xff] }
  0xb2   : > { %v831_v53 = vld [vmem:[#allocation5 + $0x8f8] sm:$0xff] }
  0xb3   : > { %2454 = vmatpush1.bf16.msra.mxu0 %v2453_v17  ;;  %v2573_v17 = vpack.c.bf16 %v756_v8, %v752_v7  ;;  %v796_v7 = vld [vmem:[#allocation5 + $0x7e0] sm:$0xff]  ;;  %v794_v8 = vld [vmem:[#allocation5 + $0x7d0] sm:$0xff] }
  0xb4   : > { %2554 = vmatpush1.bf16.msra.mxu1 %v2553_v18  ;;  %2456 = vmatprep.subr.bf16.mxu0 %v2455_v20  ;;  %v2673_v18 = vpack.c.bf16 %v758_v11, %v754_v9  ;;  %v2575_v20 = vpack.c.bf16 %v765_v13, %v761_v12  ;;  %v2691_v9 = vpack.c.bf16 %v799_v2, %v795_v1  ;;  %v801_v11 = vld [vmem:[#allocation5 + $0x808] sm:$0xff]  ;;  %v803_v13 = vld [vmem:[#allocation5 + $0x818] sm:$0xff] }
  0xb5   : > { %2556 = vmatprep.subr.bf16.mxu1 %v2555_v24  ;;  %v2675_v24 = vpack.c.bf16 %v767_v15, %v763_v14  ;;  %v805_v12 = vld [vmem:[#allocation5 + $0x828] sm:$0xff]  ;;  %v807_v14 = vld [vmem:[#allocation5 + $0x838] sm:$0xff] }
  0xb6   : > { %v839_v1 = vld [vmem:[#allocation5 + $0x938] sm:$0xff] }
  0xb7   : > { %2458 = vmatpush1.bf16.msra.mxu0 %v2457_v31  ;;  %v2677_v31 = vpack.c.bf16 %v766_v25, %v762_v23  ;;  %v2695_v23 = vpack.c.bf16 %v807_v14, %v803_v13  ;;  %v809_v25 = vld [vmem:[#allocation5 + $0x848] sm:$0xff]  ;;  %v847_v13 = vld [vmem:[#allocation5 + $0x978] sm:$0xff] }
  0xb8   : > { %2558 = vmatpush1.bf16.msra.mxu1 %v2557_v33  ;;  %2460 = vmatprep.subr.bf16.mxu0 %v2459_v34  ;;  %v2579_v33 = vpack.c.bf16 %v773_v27, %v769_v26  ;;  %v768_v34 = vld [vmem:[#allocation5 + $0x700] sm:$0xff]  ;;  %v813_v26 = vld [vmem:[#allocation5 + $0x868] sm:$0xff]  ;;  %v811_v27 = vld [vmem:[#allocation5 + $0x858] sm:$0xff] }
  0xb9   : > { %2560 = vmatprep.subr.bf16.mxu1 %v2559_v38  ;;  %v774_v38 = vld [vmem:[#allocation5 + $0x730] sm:$0xff]  ;;  %v2581_v43 = vpack.c.bf16 %v772_v35, %v768_v34  ;;  %v812_v34 = vld [vmem:[#allocation5 + $0x860] sm:$0xff] }
  0xba   : > { %v810_v35 = vld [vmem:[#allocation5 + $0x850] sm:$0xff] }
  0xbb   : > { %2462 = vmatpush1.bf16.msra.mxu0 %v2461_v44  ;;  %v2681_v44 = vpack.c.bf16 %v774_v38, %v770_v36  ;;  %v2699_v36 = vpack.c.bf16 %v815_v28, %v811_v27  ;;  %v817_v38 = vld [vmem:[#allocation5 + $0x888] sm:$0xff]  ;;  %v855_v27 = vld [vmem:[#allocation5 + $0x9b8] sm:$0xff] }
  0xbc   : > { %2562 = vmatpush1.bf16.msra.mxu1 %v2561_v45  ;;  %2464 = vmatprep.subr.bf16.mxu0 %v2463_v46  ;;  %v2583_v45 = vpack.c.bf16 %v781_v40, %v777_v39  ;;  %v776_v46 = vld [vmem:[#allocation5 + $0x740] sm:$0xff]  ;;  %v821_v39 = vld [vmem:[#allocation5 + $0x8a8] sm:$0xff]  ;;  %v819_v40 = vld [vmem:[#allocation5 + $0x898] sm:$0xff] }
  0xbd   : > { %2564 = vmatprep.subr.bf16.mxu1 %v2563_v50  ;;  %v782_v50 = vld [vmem:[#allocation5 + $0x770] sm:$0xff]  ;;  %v2585_v55 = vpack.c.bf16 %v780_v47, %v776_v46  ;;  %v820_v46 = vld [vmem:[#allocation5 + $0x8a0] sm:$0xff] }
  0xbe   : > { %v818_v47 = vld [vmem:[#allocation5 + $0x890] sm:$0xff] }
  0xbf   : > { %2466 = vmatpush1.bf16.msra.mxu0 %v2465_v56  ;;  %v2685_v56 = vpack.c.bf16 %v782_v50, %v778_v48  ;;  %v2703_v48 = vpack.c.bf16 %v823_v41, %v819_v40  ;;  %v825_v50 = vld [vmem:[#allocation5 + $0x8c8] sm:$0xff]  ;;  %v863_v40 = vld [vmem:[#allocation5 + $0x9f8] sm:$0xff] }
  0xc0   : > { %2566 = vmatpush1.bf16.msra.mxu1 %v2565_v57  ;;  %2568 = vmatprep.subr.bf16.mxu0 %v2567_v58  ;;  %v2587_v57 = vpack.c.bf16 %v789_v52, %v785_v51  ;;  %v784_v58 = vld [vmem:[#allocation5 + $0x780] sm:$0xff]  ;;  %v829_v51 = vld [vmem:[#allocation5 + $0x8e8] sm:$0xff]  ;;  %v827_v52 = vld [vmem:[#allocation5 + $0x8d8] sm:$0xff] }
  0xc1   : > { %2668 = vmatprep.subr.bf16.mxu1 %v2667_v62  ;;  %v790_v62 = vld [vmem:[#allocation5 + $0x7b0] sm:$0xff]  ;;  %v2589_v3 = vpack.c.bf16 %v788_v59, %v784_v58  ;;  %v828_v58 = vld [vmem:[#allocation5 + $0x8e0] sm:$0xff] }
  0xc2   : > { %594 = vmatmul.mubr.f32.vlgmr.msra.gmra.mrb[0].mxu0 %v3421_v30  ;;  %v826_v59 = vld [vmem:[#allocation5 + $0x8d0] sm:$0xff] }
  0xc3   : > { %736 = vmatmul.mubr.f32.vlgmr.msra.gmra.mrb[0].mxu1 %v3421_v30  ;;  %2570 = vmatpush1.bf16.msra.mxu0 %v2569_v4  ;;  %v2577_v30 = vpack.c.bf16 %v764_v22, %v760_v21  ;;  %v2689_v4 = vpack.c.bf16 %v790_v62, %v786_v60  ;;  %v804_v21 = vld [vmem:[#allocation5 + $0x820] sm:$0xff]  ;;  %v802_v22 = vld [vmem:[#allocation5 + $0x810] sm:$0xff]  ;;  %v2707_v60 = vpack.c.bf16 %v831_v53, %v827_v52  ;;  %v833_v62 = vld [vmem:[#allocation5 + $0x908] sm:$0xff] }
  0xc4   : > { %2670 = vmatpush1.bf16.msra.mxu1 %v2669_v5  ;;  %2572 = vmatprep.subr.bf16.mxu0 %v2571_v6  ;;  %v2591_v5 = vpack.c.bf16 %v797_v0, %v793_v63  ;;  %v792_v6 = vld [vmem:[#allocation5 + $0x7c0] sm:$0xff]  ;;  %v837_v63 = vld [vmem:[#allocation5 + $0x928] sm:$0xff]  ;;  %v835_v0 = vld [vmem:[#allocation5 + $0x918] sm:$0xff] }
  0xc5   : > { %2672 = vmatprep.subr.bf16.mxu1 %v2671_v10  ;;  %1008 = vmatprep.mubr.f32.mxu0 %v3415_v19  ;;  %v798_v10 = vld [vmem:[#allocation5 + $0x7f0] sm:$0xff]  ;;  %v2593_v15 = vpack.c.bf16 %v796_v7, %v792_v6  ;;  %v836_v6 = vld [vmem:[#allocation5 + $0x920] sm:$0xff]  ;;  %v871_v52 = vld [vmem:[#allocation5 + $0xa38] sm:$0xff] }
  0xc6   : > { %1150 = vmatprep.mubr.f32.mxu1 %v3415_v19  ;;  %v834_v7 = vld [vmem:[#allocation5 + $0x910] sm:$0xff] }
  0xc7   : > { %2574 = vmatpush1.bf16.msra.mxu0 %v2573_v17  ;;  %v2693_v17 = vpack.c.bf16 %v798_v10, %v794_v8  ;;  %v2711_v8 = vpack.c.bf16 %v839_v1, %v835_v0  ;;  %v841_v10 = vld [vmem:[#allocation5 + $0x948] sm:$0xff]  ;;  %v879_v0 = vld [vmem:[#allocation5 + $0xa78] sm:$0xff] }
  0xc8   : > { %2674 = vmatpush1.bf16.msra.mxu1 %v2673_v18  ;;  %2576 = vmatprep.subr.bf16.mxu0 %v2575_v20  ;;  %v2595_v18 = vpack.c.bf16 %v805_v12, %v801_v11  ;;  %v800_v20 = vld [vmem:[#allocation5 + $0x800] sm:$0xff]  ;;  %v845_v11 = vld [vmem:[#allocation5 + $0x968] sm:$0xff]  ;;  %v843_v12 = vld [vmem:[#allocation5 + $0x958] sm:$0xff] }
  0xc9   : > { %2676 = vmatprep.subr.bf16.mxu1 %v2675_v24  ;;  %v806_v24 = vld [vmem:[#allocation5 + $0x830] sm:$0xff]  ;;  %v2597_v29 = vpack.c.bf16 %v804_v21, %v800_v20  ;;  %v844_v20 = vld [vmem:[#allocation5 + $0x960] sm:$0xff] }
  0xca   : > { %v842_v21 = vld [vmem:[#allocation5 + $0x950] sm:$0xff] }
  0xcb   : > { %2578 = vmatpush1.bf16.msra.mxu0 %v2577_v30  ;;  %v2697_v30 = vpack.c.bf16 %v806_v24, %v802_v22  ;;  %v2715_v22 = vpack.c.bf16 %v847_v13, %v843_v12  ;;  %v849_v24 = vld [vmem:[#allocation5 + $0x988] sm:$0xff]  ;;  %v887_v12 = vld [vmem:[#allocation5 + $0xab8] sm:$0xff] }
  0xcc   : > { %2678 = vmatpush1.bf16.msra.mxu1 %v2677_v31  ;;  %2580 = vmatprep.subr.bf16.mxu0 %v2579_v33  ;;  %v2599_v31 = vpack.c.bf16 %v813_v26, %v809_v25  ;;  %v808_v33 = vld [vmem:[#allocation5 + $0x840] sm:$0xff]  ;;  %v853_v25 = vld [vmem:[#allocation5 + $0x9a8] sm:$0xff]  ;;  %v851_v26 = vld [vmem:[#allocation5 + $0x998] sm:$0xff] }
  0xcd   : > { %2680 = vmatprep.subr.bf16.mxu1 %v2679_v37  ;;  %v814_v37 = vld [vmem:[#allocation5 + $0x870] sm:$0xff]  ;;  %v2601_v42 = vpack.c.bf16 %v812_v34, %v808_v33  ;;  %v852_v33 = vld [vmem:[#allocation5 + $0x9a0] sm:$0xff] }
  0xce   : > { %v850_v34 = vld [vmem:[#allocation5 + $0x990] sm:$0xff] }
  0xcf   : > { %2582 = vmatpush1.bf16.msra.mxu0 %v2581_v43  ;;  %v2701_v43 = vpack.c.bf16 %v814_v37, %v810_v35  ;;  %v2719_v35 = vpack.c.bf16 %v855_v27, %v851_v26  ;;  %v857_v37 = vld [vmem:[#allocation5 + $0x9c8] sm:$0xff]  ;;  %v895_v26 = vld [vmem:[#allocation5 + $0xaf8] sm:$0xff]  ;;  %v3438_v27 = vld [vmem:[%s3400_s7] sm:$0xff] }
  0xd0   : > { %2682 = vmatpush1.bf16.msra.mxu1 %v2681_v44  ;;  %2584 = vmatprep.subr.bf16.mxu0 %v2583_v45  ;;  %v2603_v44 = vpack.c.bf16 %v821_v39, %v817_v38  ;;  %v816_v45 = vld [vmem:[#allocation5 + $0x880] sm:$0xff]  ;;  %v861_v38 = vld [vmem:[#allocation5 + $0x9e8] sm:$0xff]  ;;  %v859_v39 = vld [vmem:[#allocation5 + $0x9d8] sm:$0xff] }
  0xd1   : > { %2684 = vmatprep.subr.bf16.mxu1 %v2683_v49  ;;  %v822_v49 = vld [vmem:[#allocation5 + $0x8b0] sm:$0xff]  ;;  %v2605_v54 = vpack.c.bf16 %v820_v46, %v816_v45  ;;  %v860_v45 = vld [vmem:[#allocation5 + $0x9e0] sm:$0xff] }
  0xd2   : > { %v858_v46 = vld [vmem:[#allocation5 + $0x9d0] sm:$0xff] }
  0xd3   : > { %2586 = vmatpush1.bf16.msra.mxu0 %v2585_v55  ;;  %v2705_v55 = vpack.c.bf16 %v822_v49, %v818_v47  ;;  %v2723_v47 = vpack.c.bf16 %v863_v40, %v859_v39  ;;  %v865_v49 = vld [vmem:[#allocation5 + $0xa08] sm:$0xff]  ;;  %v903_v39 = vld [vmem:[#allocation5 + $0xb38] sm:$0xff] }
  0xd4   : > { %2686 = vmatpush1.bf16.msra.mxu1 %v2685_v56  ;;  %2588 = vmatprep.subr.bf16.mxu0 %v2587_v57  ;;  %v2607_v56 = vpack.c.bf16 %v829_v51, %v825_v50  ;;  %v824_v57 = vld [vmem:[#allocation5 + $0x8c0] sm:$0xff]  ;;  %v869_v50 = vld [vmem:[#allocation5 + $0xa28] sm:$0xff]  ;;  %v867_v51 = vld [vmem:[#allocation5 + $0xa18] sm:$0xff] }
  0xd5   : > { %2688 = vmatprep.subr.bf16.mxu1 %v2687_v61  ;;  %v830_v61 = vld [vmem:[#allocation5 + $0x8f0] sm:$0xff]  ;;  %v2609_v2 = vpack.c.bf16 %v828_v58, %v824_v57  ;;  %v868_v57 = vld [vmem:[#allocation5 + $0xa20] sm:$0xff] }
  0xd6   : > { %v866_v58 = vld [vmem:[#allocation5 + $0xa10] sm:$0xff] }
  0xd7   : > { %2590 = vmatpush1.bf16.msra.mxu0 %v2589_v3  ;;  %v2709_v3 = vpack.c.bf16 %v830_v61, %v826_v59  ;;  %v2727_v59 = vpack.c.bf16 %v871_v52, %v867_v51  ;;  %v873_v61 = vld [vmem:[#allocation5 + $0xa48] sm:$0xff]  ;;  %v911_v51 = vld [vmem:[#allocation5 + $0xb78] sm:$0xff] }
  0xd8   : > { %2690 = vmatpush1.bf16.msra.mxu1 %v2689_v4  ;;  %2592 = vmatprep.subr.bf16.mxu0 %v2591_v5  ;;  %v2611_v4 = vpack.c.bf16 %v837_v63, %v833_v62  ;;  %v832_v5 = vld [vmem:[#allocation5 + $0x900] sm:$0xff]  ;;  %v877_v62 = vld [vmem:[#allocation5 + $0xa68] sm:$0xff]  ;;  %v875_v63 = vld [vmem:[#allocation5 + $0xa58] sm:$0xff] }
  0xd9   : > { %2692 = vmatprep.subr.bf16.mxu1 %v2691_v9  ;;  %v838_v9 = vld [vmem:[#allocation5 + $0x930] sm:$0xff]  ;;  %v2613_v14 = vpack.c.bf16 %v836_v6, %v832_v5  ;;  %v876_v5 = vld [vmem:[#allocation5 + $0xa60] sm:$0xff] }
  0xda   : > { %v874_v6 = vld [vmem:[#allocation5 + $0xa50] sm:$0xff] }
  0xdb   : > { %2594 = vmatpush1.bf16.msra.mxu0 %v2593_v15  ;;  %v2713_v15 = vpack.c.bf16 %v838_v9, %v834_v7  ;;  %v2731_v7 = vpack.c.bf16 %v879_v0, %v875_v63  ;;  %v881_v9 = vld [vmem:[#allocation5 + $0xa88] sm:$0xff]  ;;  %v919_v63 = vld [vmem:[#allocation5 + $0xbb8] sm:$0xff] }
  0xdc   : > { %2694 = vmatpush1.bf16.msra.mxu1 %v2693_v17  ;;  %2596 = vmatprep.subr.bf16.mxu0 %v2595_v18  ;;  %v2615_v17 = vpack.c.bf16 %v845_v11, %v841_v10  ;;  %v840_v18 = vld [vmem:[#allocation5 + $0x940] sm:$0xff]  ;;  %v885_v10 = vld [vmem:[#allocation5 + $0xaa8] sm:$0xff]  ;;  %v883_v11 = vld [vmem:[#allocation5 + $0xa98] sm:$0xff] }
  0xdd   : > { %2696 = vmatprep.subr.bf16.mxu1 %v2695_v23  ;;  %v846_v23 = vld [vmem:[#allocation5 + $0x970] sm:$0xff]  ;;  %v2617_v28 = vpack.c.bf16 %v844_v20, %v840_v18  ;;  %v884_v18 = vld [vmem:[#allocation5 + $0xaa0] sm:$0xff] }
  0xde   : > { %v882_v20 = vld [vmem:[#allocation5 + $0xa90] sm:$0xff] }
  0xdf   : > { %2598 = vmatpush1.bf16.msra.mxu0 %v2597_v29  ;;  %v2717_v29 = vpack.c.bf16 %v846_v23, %v842_v21  ;;  %v2735_v21 = vpack.c.bf16 %v887_v12, %v883_v11  ;;  %v889_v23 = vld [vmem:[#allocation5 + $0xac8] sm:$0xff]  ;;  %v927_v11 = vld [vmem:[#allocation5 + $0xbf8] sm:$0xff] }
  0xe0   : > { %2698 = vmatpush1.bf16.msra.mxu1 %v2697_v30  ;;  %2600 = vmatprep.subr.bf16.mxu0 %v2599_v31  ;;  %v2619_v30 = vpack.c.bf16 %v853_v25, %v849_v24  ;;  %v848_v31 = vld [vmem:[#allocation5 + $0x980] sm:$0xff]  ;;  %v893_v24 = vld [vmem:[#allocation5 + $0xae8] sm:$0xff]  ;;  %v891_v25 = vld [vmem:[#allocation5 + $0xad8] sm:$0xff] }
  0xe1   : > { %2700 = vmatprep.subr.bf16.mxu1 %v2699_v36  ;;  %v854_v36 = vld [vmem:[#allocation5 + $0x9b0] sm:$0xff]  ;;  %v2621_v41 = vpack.c.bf16 %v852_v33, %v848_v31  ;;  %v888_v31 = vld [vmem:[#allocation5 + $0xac0] sm:$0xff] }
  0xe2   : > { %v892_v33 = vld [vmem:[#allocation5 + $0xae0] sm:$0xff] }
  0xe3   : > { %2602 = vmatpush1.bf16.msra.mxu0 %v2601_v42  ;;  %v2721_v42 = vpack.c.bf16 %v854_v36, %v850_v34  ;;  %v890_v34 = vld [vmem:[#allocation5 + $0xad0] sm:$0xff]  ;;  %v2641_v40 = vpack.c.bf16 %v892_v33, %v888_v31  ;;  %v932_v31 = vld [vmem:[#allocation5 + $0xc20] sm:$0xff] }
  0xe4   : > { %2702 = vmatpush1.bf16.msra.mxu1 %v2701_v43  ;;  %2604 = vmatprep.subr.bf16.mxu0 %v2603_v44  ;;  %v2623_v43 = vpack.c.bf16 %v861_v38, %v857_v37  ;;  %v856_v44 = vld [vmem:[#allocation5 + $0x9c0] sm:$0xff]  ;;  %v894_v36 = vld [vmem:[#allocation5 + $0xaf0] sm:$0xff]  ;;  %v897_v37 = vld [vmem:[#allocation5 + $0xb08] sm:$0xff] }
  0xe5   : > { %2704 = vmatprep.subr.bf16.mxu1 %v2703_v48  ;;  %v862_v48 = vld [vmem:[#allocation5 + $0x9f0] sm:$0xff]  ;;  %v2625_v53 = vpack.c.bf16 %v860_v45, %v856_v44  ;;  %v899_v38 = vld [vmem:[#allocation5 + $0xb18] sm:$0xff]  ;;  %v900_v44 = vld [vmem:[#allocation5 + $0xb20] sm:$0xff] }
  0xe6   : > { %v898_v45 = vld [vmem:[#allocation5 + $0xb10] sm:$0xff] }
  0xe7   : > { %2606 = vmatpush1.bf16.msra.mxu0 %v2605_v54  ;;  %v2725_v54 = vpack.c.bf16 %v862_v48, %v858_v46  ;;  %v2743_v46 = vpack.c.bf16 %v903_v39, %v899_v38  ;;  %v905_v48 = vld [vmem:[#allocation5 + $0xb48] sm:$0xff]  ;;  %v930_v33 = vld [vmem:[#allocation5 + $0xc10] sm:$0xff]  ;;  %v943_v38 = vld [vmem:[#allocation5 + $0xc78] sm:$0xff] }
  0xe8   : > { %2706 = vmatpush1.bf16.msra.mxu1 %v2705_v55  ;;  %2608 = vmatprep.subr.bf16.mxu0 %v2607_v56  ;;  %v2627_v55 = vpack.c.bf16 %v869_v50, %v865_v49  ;;  %v864_v56 = vld [vmem:[#allocation5 + $0xa00] sm:$0xff]  ;;  %v909_v49 = vld [vmem:[#allocation5 + $0xb68] sm:$0xff]  ;;  %v907_v50 = vld [vmem:[#allocation5 + $0xb58] sm:$0xff] }
  0xe9   : > { %2708 = vmatprep.subr.bf16.mxu1 %v2707_v60  ;;  %v870_v60 = vld [vmem:[#allocation5 + $0xa30] sm:$0xff]  ;;  %v2629_v1 = vpack.c.bf16 %v868_v57, %v864_v56  ;;  %v908_v56 = vld [vmem:[#allocation5 + $0xb60] sm:$0xff] }
  0xea   : > { %v906_v57 = vld [vmem:[#allocation5 + $0xb50] sm:$0xff] }
  0xeb   : > { %2610 = vmatpush1.bf16.msra.mxu0 %v2609_v2  ;;  %v2729_v2 = vpack.c.bf16 %v870_v60, %v866_v58  ;;  %v2747_v58 = vpack.c.bf16 %v911_v51, %v907_v50  ;;  %v913_v60 = vld [vmem:[#allocation5 + $0xb88] sm:$0xff]  ;;  %v3219_v50 = vmov 0.0  }
  0xec   : > { %2710 = vmatpush1.bf16.msra.mxu1 %v2709_v3  ;;  %2612 = vmatprep.subr.bf16.mxu0 %v2611_v4  ;;  %v2631_v3 = vpack.c.bf16 %v877_v62, %v873_v61  ;;  %v872_v4 = vld [vmem:[#allocation5 + $0xa40] sm:$0xff]  ;;  %v917_v61 = vld [vmem:[#allocation5 + $0xba8] sm:$0xff]  ;;  %v915_v62 = vld [vmem:[#allocation5 + $0xb98] sm:$0xff] }
  0xed   : > { %2712 = vmatprep.subr.bf16.mxu1 %v2711_v8  ;;  %v878_v8 = vld [vmem:[#allocation5 + $0xa70] sm:$0xff]  ;;  %v2633_v13 = vpack.c.bf16 %v876_v5, %v872_v4  ;;  %v916_v4 = vld [vmem:[#allocation5 + $0xba0] sm:$0xff] }
  0xee   : > { %v914_v5 = vld [vmem:[#allocation5 + $0xb90] sm:$0xff] }
  0xef   : > { %2614 = vmatpush1.bf16.msra.mxu0 %v2613_v14  ;;  %v2733_v14 = vpack.c.bf16 %v878_v8, %v874_v6  ;;  %v2751_v6 = vpack.c.bf16 %v919_v63, %v915_v62  ;;  %v921_v8 = vld [vmem:[#allocation5 + $0xbc8] sm:$0xff]  ;;  %v1550_v62 = vld [vmem:[#allocation5 + $0xc98] sm:$0xff] }
  0xf0   : > { %2714 = vmatpush1.bf16.msra.mxu1 %v2713_v15  ;;  %2616 = vmatprep.subr.bf16.mxu0 %v2615_v17  ;;  %v2635_v15 = vpack.c.bf16 %v885_v10, %v881_v9  ;;  %v880_v17 = vld [vmem:[#allocation5 + $0xa80] sm:$0xff]  ;;  %v925_v9 = vld [vmem:[#allocation5 + $0xbe8] sm:$0xff]  ;;  %v923_v10 = vld [vmem:[#allocation5 + $0xbd8] sm:$0xff] }
  0xf1   : > { %2716 = vmatprep.subr.bf16.mxu1 %v2715_v22  ;;  %v886_v22 = vld [vmem:[#allocation5 + $0xab0] sm:$0xff]  ;;  %v1554_v63 = vld [vmem:[#allocation5 + $0xcb8] sm:$0xff] }
  0xf3   : > { %2618 = vmatpush1.bf16.msra.mxu0 %v2617_v28  ;;  %v2637_v28 = vpack.c.bf16 %v884_v18, %v880_v17  ;;  %v924_v17 = vld [vmem:[#allocation5 + $0xbe0] sm:$0xff]  ;;  %v922_v18 = vld [vmem:[#allocation5 + $0xbd0] sm:$0xff] }
  0xf4   : > { %2718 = vmatpush1.bf16.msra.mxu1 %v2717_v29  ;;  %2620 = vmatprep.subr.bf16.mxu0 %v2619_v30  ;;  %v2737_v29 = vpack.c.bf16 %v886_v22, %v882_v20  ;;  %v2639_v30 = vpack.c.bf16 %v893_v24, %v889_v23  ;;  %v2755_v20 = vpack.c.bf16 %v927_v11, %v923_v10  ;;  %v929_v22 = vld [vmem:[#allocation5 + $0xc08] sm:$0xff]  ;;  %v931_v24 = vld [vmem:[#allocation5 + $0xc18] sm:$0xff]  ;;  %v742_v10 = vld [vmem:[%s3553_s2] sm:$0xff] }
  0xf5   : > { %2720 = vmatprep.subr.bf16.mxu1 %v2719_v35  ;;  %v2739_v35 = vpack.c.bf16 %v895_v26, %v891_v25  ;;  %v933_v23 = vld [vmem:[#allocation5 + $0xc28] sm:$0xff]  ;;  %v935_v25 = vld [vmem:[#allocation5 + $0xc38] sm:$0xff] }
  0xf7   : > { %2622 = vmatpush1.bf16.msra.mxu0 %v2621_v41  ;;  %v2741_v41 = vpack.c.bf16 %v894_v36, %v890_v34  ;;  %v2759_v34 = vpack.c.bf16 %v935_v25, %v931_v24  ;;  %v937_v36 = vld [vmem:[#allocation5 + $0xc48] sm:$0xff]  ;;  %v1570_v24 = vld [vmem:[#allocation5 + $0xd38] sm:$0xff] }
  0xf8   : > { %2722 = vmatpush1.bf16.msra.mxu1 %v2721_v42  ;;  %2624 = vmatprep.subr.bf16.mxu0 %v2623_v43  ;;  %v896_v43 = vld [vmem:[#allocation5 + $0xb00] sm:$0xff] }
  0xf9   : > { %2724 = vmatprep.subr.bf16.mxu1 %v2723_v47  ;;  %v902_v47 = vld [vmem:[#allocation5 + $0xb30] sm:$0xff]  ;;  %v2645_v52 = vpack.c.bf16 %v900_v44, %v896_v43  ;;  %v940_v43 = vld [vmem:[#allocation5 + $0xc60] sm:$0xff] }
  0xfb   : > { %2626 = vmatpush1.bf16.msra.mxu0 %v2625_v53  ;;  %v2745_v53 = vpack.c.bf16 %v902_v47, %v898_v45  ;;  %v938_v45 = vld [vmem:[#allocation5 + $0xc50] sm:$0xff] }
  0xfc   : > { %2726 = vmatpush1.bf16.msra.mxu1 %v2725_v54  ;;  %2628 = vmatprep.subr.bf16.mxu0 %v2627_v55  ;;  %v2647_v54 = vpack.c.bf16 %v909_v49, %v905_v48  ;;  %v904_v55 = vld [vmem:[#allocation5 + $0xb40] sm:$0xff]  ;;  %v3446_v49 = vld [vmem:[%s3400_s7 + $0x8] sm:$0xff]  ;;  %s3501_s7 = scalar_lea.hbm %s3555_s4, %s2366_s13 }
  0xfd   : > { %2728 = vmatprep.subr.bf16.mxu1 %v2727_v59  ;;  %v910_v59 = vld [vmem:[#allocation5 + $0xb70] sm:$0xff]  ;;  %v2649_v0 = vpack.c.bf16 %v908_v56, %v904_v55 }
  0xff   : > { %2630 = vmatpush1.bf16.msra.mxu0 %v2629_v1  ;;  %v2749_v1 = vpack.c.bf16 %v910_v59, %v906_v57  ;;  %v1548_v59 = vld [vmem:[#allocation5 + $0xc88] sm:$0xff] }
 0x100   : > { %2730 = vmatpush1.bf16.msra.mxu1 %v2729_v2  ;;  %2632 = vmatprep.subr.bf16.mxu0 %v2631_v3  ;;  %v2651_v2 = vpack.c.bf16 %v917_v61, %v913_v60  ;;  %v912_v3 = vld [vmem:[#allocation5 + $0xb80] sm:$0xff]  ;;  %v1552_v60 = vld [vmem:[#allocation5 + $0xca8] sm:$0xff] }
 0x101   : > { %2732 = vmatprep.subr.bf16.mxu1 %v2731_v7  ;;  %v918_v7 = vld [vmem:[#allocation5 + $0xbb0] sm:$0xff]  ;;  %v2653_v12 = vpack.c.bf16 %v916_v4, %v912_v3  ;;  %v1551_v3 = vld [vmem:[#allocation5 + $0xca0] sm:$0xff] }
 0x102   : > { %1009 = vmatmul.mubr.f32.vlgmr.msra.gmra.mrb[2].mxu0 %v3411_v16  ;;  %v901_v16 = vld [vmem:[#allocation5 + $0xb28] sm:$0xff]  ;;  %v1549_v4 = vld [vmem:[#allocation5 + $0xc90] sm:$0xff] }
 0x103   : > { %2634 = vmatpush1.bf16.msra.mxu0 %v2633_v13  ;;  %1151 = vmatmul.mubr.f32.vlgmr.msra.gmra.mrb[2].mxu1 %v3438_v27  ;;  %v2643_v42 = vpack.c.bf16 %v901_v16, %v897_v37  ;;  %v2753_v13 = vpack.c.bf16 %v918_v7, %v914_v5  ;;  %v941_v37 = vld [vmem:[#allocation5 + $0xc68] sm:$0xff]  ;;  %v939_v16 = vld [vmem:[#allocation5 + $0xc58] sm:$0xff]  ;;  %v1553_v5 = vld [vmem:[#allocation5 + $0xcb0] sm:$0xff] }
 0x104   : > { %2734 = vmatpush1.bf16.msra.mxu1 %v2733_v14  ;;  %2636 = vmatprep.subr.bf16.mxu0 %v2635_v15  ;;  %v2655_v14 = vpack.c.bf16 %v925_v9, %v921_v8  ;;  %v920_v15 = vld [vmem:[#allocation5 + $0xbc0] sm:$0xff]  ;;  %v2763_v44 = vpack.c.bf16 %v943_v38, %v939_v16  ;;  %v1560_v7 = vld [vmem:[#allocation5 + $0xce8] sm:$0xff]  ;;  %v1558_v8 = vld [vmem:[#allocation5 + $0xcd8] sm:$0xff] }
 0x105   : > { %2736 = vmatprep.subr.bf16.mxu1 %v2735_v21  ;;  %2336 = vmatprep.mubr.msk.f32.mxu0 %vm455_vm0, %v3426_v32  ;;  %v926_v21 = vld [vmem:[#allocation5 + $0xbf0] sm:$0xff]  ;;  %v2657_v26 = vpack.c.bf16 %v924_v17, %v920_v15  ;;  %v1562_v9 = vld [vmem:[#allocation5 + $0xcf8] sm:$0xff]  ;;  %v1559_v15 = vld [vmem:[#allocation5 + $0xce0] sm:$0xff] }
 0x106   : > { %2337 = vmatprep.mubr.msk.f32.mxu1 %vm455_vm0, %v3426_v32  ;;  %v1557_v17 = vld [vmem:[#allocation5 + $0xcd0] sm:$0xff]  ;;  %v1578_v16 = vld [vmem:[#allocation5 + $0xd78] sm:$0xff] }
 0x107   : > { %2638 = vmatpush1.bf16.msra.mxu0 %v2637_v28  ;;  %v2757_v28 = vpack.c.bf16 %v926_v21, %v922_v18  ;;  %v2871_v18 = vpack.c.bf16 %v1562_v9, %v1558_v8  ;;  %v1564_v21 = vld [vmem:[#allocation5 + $0xd08] sm:$0xff]  ;;  %v1598_v9 = vld [vmem:[#allocation5 + $0xe18] sm:$0xff] }
 0x108   : > { %2738 = vmatpush1.bf16.msra.mxu1 %v2737_v29  ;;  %2640 = vmatprep.subr.bf16.mxu0 %v2639_v30  ;;  %v2659_v29 = vpack.c.bf16 %v933_v23, %v929_v22  ;;  %v928_v30 = vld [vmem:[#allocation5 + $0xc00] sm:$0xff]  ;;  %v1568_v22 = vld [vmem:[#allocation5 + $0xd28] sm:$0xff]  ;;  %v1566_v23 = vld [vmem:[#allocation5 + $0xd18] sm:$0xff] }
 0x109   : > { %2740 = vmatprep.subr.bf16.mxu1 %v2739_v35  ;;  %v934_v35 = vld [vmem:[#allocation5 + $0xc30] sm:$0xff]  ;;  %v2661_v39 = vpack.c.bf16 %v932_v31, %v928_v30  ;;  %v1567_v30 = vld [vmem:[#allocation5 + $0xd20] sm:$0xff]  ;;  %v1600_v8 = vld [vmem:[#allocation5 + $0xe28] sm:$0xff] }
 0x10a   : > { %v1565_v31 = vld [vmem:[#allocation5 + $0xd10] sm:$0xff] }
 0x10b   : > { %2642 = vmatpush1.bf16.msra.mxu0 %v2641_v40  ;;  %v2761_v40 = vpack.c.bf16 %v934_v35, %v930_v33  ;;  %v2875_v33 = vpack.c.bf16 %v1570_v24, %v1566_v23  ;;  %v1572_v35 = vld [vmem:[#allocation5 + $0xd48] sm:$0xff]  ;;  %v1606_v23 = vld [vmem:[#allocation5 + $0xe58] sm:$0xff] }
 0x10c   : > { %2742 = vmatpush1.bf16.msra.mxu1 %v2741_v41  ;;  %2644 = vmatprep.subr.bf16.mxu0 %v2643_v42  ;;  %v2663_v41 = vpack.c.bf16 %v941_v37, %v937_v36  ;;  %v936_v42 = vld [vmem:[#allocation5 + $0xc40] sm:$0xff]  ;;  %v1576_v36 = vld [vmem:[#allocation5 + $0xd68] sm:$0xff]  ;;  %v1574_v37 = vld [vmem:[#allocation5 + $0xd58] sm:$0xff] }
 0x10d   : > { %2744 = vmatprep.subr.bf16.mxu1 %v2743_v46  ;;  %v942_v46 = vld [vmem:[#allocation5 + $0xc70] sm:$0xff]  ;;  %v2665_v47 = vpack.c.bf16 %v940_v43, %v936_v42  ;;  %v1575_v42 = vld [vmem:[#allocation5 + $0xd60] sm:$0xff]  ;;  %v1610_v24 = vld [vmem:[#allocation5 + $0xe78] sm:$0xff] }
 0x10e   : > { %v2765_v48 = vpack.c.bf16 %v942_v46, %v938_v45  ;;  %v1573_v43 = vld [vmem:[#allocation5 + $0xd50] sm:$0xff]  ;;  %v1580_v46 = vld [vmem:[#allocation5 + $0xd88] sm:$0xff] }
 0x10f   : > { %2646 = vmatpush1.bf16.msra.mxu0 %v2645_v52  ;;  %v1577_v45 = vld [vmem:[#allocation5 + $0xd70] sm:$0xff] }
 0x110   : > { %2746 = vmatpush1.bf16.msra.mxu1 %v2745_v53  ;;  %2648 = vmatprep.subr.bf16.mxu0 %v2647_v54 }
 0x111   : > { %2748 = vmatprep.subr.bf16.mxu1 %v2747_v58  ;;  %v2338_v58 = vld [vmem:[%s3553_s2 + $0x8] sm:$0xff] }
 0x113   : > { %2650 = vmatpush1.bf16.msra.mxu0 %v2649_v0  ;;  %v2767_v0 = vpack.c.bf16 %v1552_v60, %v1548_v59  ;;  %v1588_v59 = vld [vmem:[#allocation5 + $0xdc8] sm:$0xff] }
 0x114   : > { %2750 = vmatpush1.bf16.msra.mxu1 %v2749_v1  ;;  %2652 = vmatprep.subr.bf16.mxu0 %v2651_v2  ;;  %v2867_v1 = vpack.c.bf16 %v1554_v63, %v1550_v62  ;;  %v1547_v2 = vld [vmem:[#allocation5 + $0xc80] sm:$0xff]  ;;  %v1592_v60 = vld [vmem:[#allocation5 + $0xde8] sm:$0xff]  ;;  %v1594_v62 = vld [vmem:[#allocation5 + $0xdf8] sm:$0xff] }
 0x115   : > { %2752 = vmatprep.subr.bf16.mxu1 %v2751_v6  ;;  %v1556_v6 = vld [vmem:[#allocation5 + $0xcc8] sm:$0xff]  ;;  %v2769_v11 = vpack.c.bf16 %v1551_v3, %v1547_v2  ;;  %v1587_v2 = vld [vmem:[#allocation5 + $0xdc0] sm:$0xff] }
 0x116   : > { %v1591_v3 = vld [vmem:[#allocation5 + $0xde0] sm:$0xff] }
 0x117   : > { %2654 = vmatpush1.bf16.msra.mxu0 %v2653_v12  ;;  %v2869_v12 = vpack.c.bf16 %v1553_v5, %v1549_v4  ;;  %v1589_v4 = vld [vmem:[#allocation5 + $0xdd0] sm:$0xff] }
 0x118   : > { %2754 = vmatpush1.bf16.msra.mxu1 %v2753_v13  ;;  %2656 = vmatprep.subr.bf16.mxu0 %v2655_v14  ;;  %v2771_v13 = vpack.c.bf16 %v1560_v7, %v1556_v6  ;;  %v1555_v14 = vld [vmem:[#allocation5 + $0xcc0] sm:$0xff]  ;;  %v1593_v6 = vld [vmem:[#allocation5 + $0xdf0] sm:$0xff]  ;;  %v1596_v7 = vld [vmem:[#allocation5 + $0xe08] sm:$0xff] }
 0x119   : > { %2756 = vmatprep.subr.bf16.mxu1 %v2755_v20  ;;  %v1561_v20 = vld [vmem:[#allocation5 + $0xcf0] sm:$0xff]  ;;  %v2773_v25 = vpack.c.bf16 %v1559_v15, %v1555_v14  ;;  %v1595_v14 = vld [vmem:[#allocation5 + $0xe00] sm:$0xff] }
 0x11a   : > { %v1599_v15 = vld [vmem:[#allocation5 + $0xe20] sm:$0xff] }
 0x11b   : > { %2658 = vmatpush1.bf16.msra.mxu0 %v2657_v26  ;;  %v2873_v26 = vpack.c.bf16 %v1561_v20, %v1557_v17  ;;  %v1597_v17 = vld [vmem:[#allocation5 + $0xe10] sm:$0xff] }
 0x11c   : > { %2758 = vmatpush1.bf16.msra.mxu1 %v2757_v28  ;;  %2660 = vmatprep.subr.bf16.mxu0 %v2659_v29  ;;  %v2775_v28 = vpack.c.bf16 %v1568_v22, %v1564_v21  ;;  %v1563_v29 = vld [vmem:[#allocation5 + $0xd00] sm:$0xff]  ;;  %v1601_v20 = vld [vmem:[#allocation5 + $0xe30] sm:$0xff]  ;;  %v1604_v21 = vld [vmem:[#allocation5 + $0xe48] sm:$0xff] }
 0x11d   : > { %2760 = vmatprep.subr.bf16.mxu1 %v2759_v34  ;;  %v1569_v34 = vld [vmem:[#allocation5 + $0xd30] sm:$0xff]  ;;  %v2777_v38 = vpack.c.bf16 %v1567_v30, %v1563_v29  ;;  %v1608_v22 = vld [vmem:[#allocation5 + $0xe68] sm:$0xff]  ;;  %v1603_v29 = vld [vmem:[#allocation5 + $0xe40] sm:$0xff] }
 0x11e   : > { %v1607_v30 = vld [vmem:[#allocation5 + $0xe60] sm:$0xff] }
 0x11f   : > { %2662 = vmatpush1.bf16.msra.mxu0 %v2661_v39  ;;  %v2877_v39 = vpack.c.bf16 %v1569_v34, %v1565_v31  ;;  %v1605_v31 = vld [vmem:[#allocation5 + $0xe50] sm:$0xff] }
 0x120   : > { %2762 = vmatpush1.bf16.msra.mxu1 %v2761_v40  ;;  %2664 = vmatprep.subr.bf16.mxu0 %v2663_v41  ;;  %v2779_v40 = vpack.c.bf16 %v1576_v36, %v1572_v35  ;;  %v1571_v41 = vld [vmem:[#allocation5 + $0xd40] sm:$0xff]  ;;  %v1609_v34 = vld [vmem:[#allocation5 + $0xe70] sm:$0xff]  ;;  %v1612_v35 = vld [vmem:[#allocation5 + $0xe88] sm:$0xff] }
 0x121   : > { %2764 = vmatprep.subr.bf16.mxu1 %v2763_v44  ;;  %v2879_v44 = vpack.c.bf16 %v1578_v16, %v1574_v37  ;;  %v1616_v36 = vld [vmem:[#allocation5 + $0xea8] sm:$0xff]  ;;  %v1614_v37 = vld [vmem:[#allocation5 + $0xe98] sm:$0xff] }
 0x122   : > { %v1618_v16 = vld [vmem:[#allocation5 + $0xeb8] sm:$0xff] }
 0x123   : > { %2666 = vmatpush1.bf16.msra.mxu0 %v2665_v47  ;;  %v1584_v47 = vld [vmem:[#allocation5 + $0xda8] sm:$0xff] }
 0x124   : > { %2766 = vmatpush1.bf16.msra.mxu1 %v2765_v48  ;;  %v1582_v48 = vld [vmem:[#allocation5 + $0xd98] sm:$0xff] }
 0x126   : > { %1080 = vmatmul.mubr.f32.vlgmr.msra.gmra.mrb[2].mxu0 %v3446_v49 }
 0x127   : > { %1222 = vmatmul.mubr.f32.vlgmr.msra.gmra.mrb[2].mxu1 %v3446_v49  ;;  %1311 = vmatprep.mubr.f32.mxu0 %v3219_v50 }
 0x128   : > { %1382 = vmatprep.mubr.f32.mxu1 %v3219_v50 }
 0x195   : > { %v595_v51 = vpop.f32.mrb[0].mxu0 }
 0x196   : > { %v737_v52 = vpop.f32.mrb[0].mxu1  ;;  %v597_v53 = vpop.f32.mrb[1].mxu0 }
 0x197   : > { %v739_v54 = vpop.f32.mrb[1].mxu1 }
 0x1f9   : > { %v1081_v55 = vpop.f32.mrb[2].mxu0 }
 0x1fa   : > { %v1223_v56 = vpop.f32.mrb[2].mxu1  ;;  %v1083_v57 = vpop.f32.mrb[3].mxu0 }
 0x1fb   : > { %v1225_v61 = vpop.f32.mrb[3].mxu1  ;;  %2339 = vmatprep.subr.msk.mxu0 %vm1234_vm1, %v1083_v57 }
 0x1fc   : > { %2342 = vmatprep.subr.msk.mxu1 %vm1234_vm1, %v1225_v61  ;;  %2340 = vmatpush1.msk.msra.mxu0 %vm1234_vm1, %v1081_v55  ;;  %v1583_v55 = vld [vmem:[#allocation5 + $0xda0] sm:$0xff]  ;;  %v1590_v61 = vld [vmem:[#allocation5 + $0xdd8] sm:$0xff] }
 0x1fd   : > { %2343 = vmatpush1.msk.msra.mxu1 %vm1234_vm1, %v1223_v56  ;;  %2341 = vmatmul.mubr.msk.f32.vlgmr.msra.gmra.mrb[4].mxu0 %vm1230_vm2, %v2338_v58  ;;  %v1581_v56 = vld [vmem:[#allocation5 + $0xd90] sm:$0xff]  ;;  %v2887_v5 = vpack.c.bf16 %v1594_v62, %v1590_v61  ;;  %v1630_v61 = vld [vmem:[#allocation5 + $0xf18] sm:$0xff] }
 0x1fe   : > { %2344 = vmatmul.mubr.msk.f32.vlgmr.msra.gmra.mrb[4].mxu1 %vm1230_vm2, %v2338_v58  ;;  %2345 = vmatprep.subr.msk.mxu0 %vm1234_vm1, %v597_v53  ;;  %v2783_v53 = vpack.c.bf16 %v1584_v47, %v1580_v46  ;;  %v1585_v58 = vld [vmem:[#allocation5 + $0xdb0] sm:$0xff]  ;;  %v1620_v46 = vld [vmem:[#allocation5 + $0xec8] sm:$0xff]  ;;  %v1634_v62 = vld [vmem:[#allocation5 + $0xf38] sm:$0xff] }
 0x1ff   : > { %2348 = vmatprep.subr.msk.mxu1 %vm1234_vm1, %v739_v54  ;;  %2346 = vmatpush1.msk.msra.mxu0 %vm1234_vm1, %v595_v51  ;;  %v1586_v51 = vld [vmem:[#allocation5 + $0xdb8] sm:$0xff]  ;;  %v1579_v54 = vld [vmem:[#allocation5 + $0xd80] sm:$0xff]  ;;  %v1624_v47 = vld [vmem:[#allocation5 + $0xee8] sm:$0xff] }
 0x200   : > { %2349 = vmatpush1.msk.msra.mxu1 %vm1234_vm1, %v737_v52  ;;  %1468 = vmatprep.mubr.f32.mxu0 %v3219_v50  ;;  %v2781_v52 = vpack.c.bf16 %v1575_v42, %v1571_v41  ;;  %v2883_v57 = vpack.c.bf16 %v1586_v51, %v1582_v48  ;;  %v2785_v63 = vpack.c.bf16 %v1583_v55, %v1579_v54  ;;  %v1611_v41 = vld [vmem:[#allocation5 + $0xe80] sm:$0xff]  ;;  %v1622_v48 = vld [vmem:[#allocation5 + $0xed8] sm:$0xff] }
 0x201   : > { %1539 = vmatprep.mubr.f32.mxu1 %v3219_v50  ;;  %2768 = vmatprep.subr.bf16.mxu0 %v2767_v0  ;;  %v2885_v0 = vpack.c.bf16 %v1585_v58, %v1581_v56  ;;  %v1615_v42 = vld [vmem:[#allocation5 + $0xea0] sm:$0xff]  ;;  %v1626_v51 = vld [vmem:[#allocation5 + $0xef8] sm:$0xff]  ;;  %v1621_v56 = vld [vmem:[#allocation5 + $0xed0] sm:$0xff] }
 0x202   : > { %2868 = vmatprep.subr.bf16.mxu1 %v2867_v1  ;;  %v2787_v1 = vpack.c.bf16 %v1592_v60, %v1588_v59  ;;  %v1619_v54 = vld [vmem:[#allocation5 + $0xec0] sm:$0xff]  ;;  %v1625_v58 = vld [vmem:[#allocation5 + $0xef0] sm:$0xff]  ;;  %v1628_v59 = vld [vmem:[#allocation5 + $0xf08] sm:$0xff] }
 0x203   : > { %v1623_v55 = vld [vmem:[#allocation5 + $0xee0] sm:$0xff]  ;;  %v1632_v60 = vld [vmem:[#allocation5 + $0xf28] sm:$0xff] }
 0x205   : > { %2347 = vmatmul.mubr.msk.f32.vlgmr.msra.gmra.mrb[4].mxu0 %vm1230_vm2, %v742_v10 }
 0x206   : > { %2350 = vmatmul.mubr.msk.f32.vlgmr.msra.gmra.mrb[4].mxu1 %vm1230_vm2, %v742_v10  ;;  %2770 = vmatpush1.bf16.msra.mxu0 %v2769_v11  ;;  %v1602_v10 = vld [vmem:[#allocation5 + $0xe38] sm:$0xff]  ;;  %v2789_v11 = vpack.c.bf16 %v1591_v3, %v1587_v2  ;;  %v1627_v2 = vld [vmem:[#allocation5 + $0xf00] sm:$0xff] }
 0x207   : > { %2870 = vmatpush1.bf16.msra.mxu1 %v2869_v12  ;;  %2772 = vmatprep.subr.bf16.mxu0 %v2771_v13  ;;  %v2889_v12 = vpack.c.bf16 %v1593_v6, %v1589_v4  ;;  %v2791_v13 = vpack.c.bf16 %v1600_v8, %v1596_v7  ;;  %v1631_v3 = vld [vmem:[#allocation5 + $0xf20] sm:$0xff]  ;;  %v1629_v4 = vld [vmem:[#allocation5 + $0xf10] sm:$0xff]  ;;  %v1636_v7 = vld [vmem:[#allocation5 + $0xf48] sm:$0xff] }
 0x208   : > { %2872 = vmatprep.subr.bf16.mxu1 %v2871_v18  ;;  %1811 = vmatprep.mubr.f32.mxu0 %v3415_v19  ;;  %v2891_v18 = vpack.c.bf16 %v1602_v10, %v1598_v9  ;;  %v1633_v6 = vld [vmem:[#allocation5 + $0xf30] sm:$0xff]  ;;  %v1640_v8 = vld [vmem:[#allocation5 + $0xf68] sm:$0xff]  ;;  %v1638_v9 = vld [vmem:[#allocation5 + $0xf58] sm:$0xff] }
 0x209   : > { %1953 = vmatprep.mubr.f32.mxu1 %v3415_v19  ;;  %v2881_v19 = vpack.c.bf16 %v1577_v45, %v1573_v43  ;;  %v1613_v43 = vld [vmem:[#allocation5 + $0xe90] sm:$0xff]  ;;  %v1642_v10 = vld [vmem:[#allocation5 + $0xf78] sm:$0xff] }
 0x20a   : > { %2774 = vmatpush1.bf16.msra.mxu0 %v2773_v25  ;;  %v2793_v25 = vpack.c.bf16 %v1599_v15, %v1595_v14  ;;  %v1617_v45 = vld [vmem:[#allocation5 + $0xeb0] sm:$0xff]  ;;  %v1635_v14 = vld [vmem:[#allocation5 + $0xf40] sm:$0xff] }
 0x20b   : > { %2874 = vmatpush1.bf16.msra.mxu1 %v2873_v26  ;;  %2776 = vmatprep.subr.bf16.mxu0 %v2775_v28  ;;  %v2893_v26 = vpack.c.bf16 %v1601_v20, %v1597_v17  ;;  %v2795_v28 = vpack.c.bf16 %v1608_v22, %v1604_v21  ;;  %v1639_v15 = vld [vmem:[#allocation5 + $0xf60] sm:$0xff]  ;;  %v1637_v17 = vld [vmem:[#allocation5 + $0xf50] sm:$0xff]  ;;  %v1644_v21 = vld [vmem:[#allocation5 + $0xf88] sm:$0xff] }
 0x20c   : > { %2876 = vmatprep.subr.bf16.mxu1 %v2875_v33  ;;  %v2895_v33 = vpack.c.bf16 %v1610_v24, %v1606_v23  ;;  %v1641_v20 = vld [vmem:[#allocation5 + $0xf70] sm:$0xff]  ;;  %v1648_v22 = vld [vmem:[#allocation5 + $0xfa8] sm:$0xff]  ;;  %v1646_v23 = vld [vmem:[#allocation5 + $0xf98] sm:$0xff] }
 0x20d   : > { %v1650_v24 = vld [vmem:[#allocation5 + $0xfb8] sm:$0xff] }
 0x20e   : > { %2778 = vmatpush1.bf16.msra.mxu0 %v2777_v38  ;;  %v2797_v38 = vpack.c.bf16 %v1607_v30, %v1603_v29  ;;  %v1643_v29 = vld [vmem:[#allocation5 + $0xf80] sm:$0xff] }
 0x20f   : > { %2878 = vmatpush1.bf16.msra.mxu1 %v2877_v39  ;;  %2780 = vmatprep.subr.bf16.mxu0 %v2779_v40  ;;  %v2897_v39 = vpack.c.bf16 %v1609_v34, %v1605_v31  ;;  %v2799_v40 = vpack.c.bf16 %v1616_v36, %v1612_v35  ;;  %v1647_v30 = vld [vmem:[#allocation5 + $0xfa0] sm:$0xff]  ;;  %v1645_v31 = vld [vmem:[#allocation5 + $0xf90] sm:$0xff]  ;;  %v1652_v35 = vld [vmem:[#allocation5 + $0xfc8] sm:$0xff] }
 0x210   : > { %2880 = vmatprep.subr.bf16.mxu1 %v2879_v44  ;;  %v2899_v44 = vpack.c.bf16 %v1618_v16, %v1614_v37  ;;  %v1649_v34 = vld [vmem:[#allocation5 + $0xfb0] sm:$0xff]  ;;  %v1656_v36 = vld [vmem:[#allocation5 + $0xfe8] sm:$0xff]  ;;  %v1654_v37 = vld [vmem:[#allocation5 + $0xfd8] sm:$0xff] }
 0x211   : > { %v1658_v16 = vld [vmem:[#allocation5 + $0xff8] sm:$0xff] }
 0x212   : > { %2782 = vmatpush1.bf16.msra.mxu0 %v2781_v52  ;;  %v2801_v52 = vpack.c.bf16 %v1615_v42, %v1611_v41  ;;  %v1651_v41 = vld [vmem:[#allocation5 + $0xfc0] sm:$0xff] }
 0x213   : > { %2882 = vmatpush1.bf16.msra.mxu1 %v2881_v19  ;;  %2784 = vmatprep.subr.bf16.mxu0 %v2783_v53  ;;  %v2901_v19 = vpack.c.bf16 %v1617_v45, %v1613_v43  ;;  %v2803_v53 = vpack.c.bf16 %v1624_v47, %v1620_v46  ;;  %v1655_v42 = vld [vmem:[#allocation5 + $0xfe0] sm:$0xff]  ;;  %v1653_v43 = vld [vmem:[#allocation5 + $0xfd0] sm:$0xff]  ;;  %v1660_v46 = vld [vmem:[#allocation5 + $0x1008] sm:$0xff] }
 0x214   : > { %2884 = vmatprep.subr.bf16.mxu1 %v2883_v57  ;;  %v2903_v57 = vpack.c.bf16 %v1626_v51, %v1622_v48  ;;  %v1657_v45 = vld [vmem:[#allocation5 + $0xff0] sm:$0xff]  ;;  %v1664_v47 = vld [vmem:[#allocation5 + $0x1028] sm:$0xff]  ;;  %v1662_v48 = vld [vmem:[#allocation5 + $0x1018] sm:$0xff] }
 0x215   : > { %v1666_v51 = vld [vmem:[#allocation5 + $0x1038] sm:$0xff] }
 0x216   : > { %2786 = vmatpush1.bf16.msra.mxu0 %v2785_v63  ;;  %v2805_v63 = vpack.c.bf16 %v1623_v55, %v1619_v54  ;;  %v1659_v54 = vld [vmem:[#allocation5 + $0x1000] sm:$0xff] }
 0x217   : > { %2886 = vmatpush1.bf16.msra.mxu1 %v2885_v0  ;;  %2788 = vmatprep.subr.bf16.mxu0 %v2787_v1  ;;  %v2905_v0 = vpack.c.bf16 %v1625_v58, %v1621_v56  ;;  %v2807_v1 = vpack.c.bf16 %v1632_v60, %v1628_v59  ;;  %v1663_v55 = vld [vmem:[#allocation5 + $0x1020] sm:$0xff]  ;;  %v1661_v56 = vld [vmem:[#allocation5 + $0x1010] sm:$0xff]  ;;  %v1668_v59 = vld [vmem:[#allocation5 + $0x1048] sm:$0xff] }
 0x218   : > { %2888 = vmatprep.subr.bf16.mxu1 %v2887_v5  ;;  %v2907_v5 = vpack.c.bf16 %v1634_v62, %v1630_v61  ;;  %v1665_v58 = vld [vmem:[#allocation5 + $0x1030] sm:$0xff]  ;;  %v1672_v60 = vld [vmem:[#allocation5 + $0x1068] sm:$0xff]  ;;  %v1670_v61 = vld [vmem:[#allocation5 + $0x1058] sm:$0xff] }
 0x219   : > { %v1674_v62 = vld [vmem:[#allocation5 + $0x1078] sm:$0xff] }
 0x21a   : > { %2790 = vmatpush1.bf16.msra.mxu0 %v2789_v11  ;;  %v2809_v11 = vpack.c.bf16 %v1631_v3, %v1627_v2  ;;  %v1667_v2 = vld [vmem:[#allocation5 + $0x1040] sm:$0xff] }
 0x21b   : > { %2890 = vmatpush1.bf16.msra.mxu1 %v2889_v12  ;;  %2792 = vmatprep.subr.bf16.mxu0 %v2791_v13  ;;  %v2909_v12 = vpack.c.bf16 %v1633_v6, %v1629_v4  ;;  %v2811_v13 = vpack.c.bf16 %v1640_v8, %v1636_v7  ;;  %v1671_v3 = vld [vmem:[#allocation5 + $0x1060] sm:$0xff]  ;;  %v1669_v4 = vld [vmem:[#allocation5 + $0x1050] sm:$0xff]  ;;  %v1676_v7 = vld [vmem:[#allocation5 + $0x1088] sm:$0xff] }
 0x21c   : > { %2892 = vmatprep.subr.bf16.mxu1 %v2891_v18  ;;  %v2911_v18 = vpack.c.bf16 %v1642_v10, %v1638_v9  ;;  %v1673_v6 = vld [vmem:[#allocation5 + $0x1070] sm:$0xff]  ;;  %v1680_v8 = vld [vmem:[#allocation5 + $0x10a8] sm:$0xff]  ;;  %v1678_v9 = vld [vmem:[#allocation5 + $0x1098] sm:$0xff] }
 0x21d   : > { %v1682_v10 = vld [vmem:[#allocation5 + $0x10b8] sm:$0xff] }
 0x21e   : > { %2794 = vmatpush1.bf16.msra.mxu0 %v2793_v25  ;;  %v2813_v25 = vpack.c.bf16 %v1639_v15, %v1635_v14  ;;  %v1675_v14 = vld [vmem:[#allocation5 + $0x1080] sm:$0xff] }
 0x21f   : > { %2894 = vmatpush1.bf16.msra.mxu1 %v2893_v26  ;;  %2796 = vmatprep.subr.bf16.mxu0 %v2795_v28  ;;  %v2913_v26 = vpack.c.bf16 %v1641_v20, %v1637_v17  ;;  %v2815_v28 = vpack.c.bf16 %v1648_v22, %v1644_v21  ;;  %v1679_v15 = vld [vmem:[#allocation5 + $0x10a0] sm:$0xff]  ;;  %v1677_v17 = vld [vmem:[#allocation5 + $0x1090] sm:$0xff]  ;;  %v1684_v21 = vld [vmem:[#allocation5 + $0x10c8] sm:$0xff] }
 0x220   : > { %2896 = vmatprep.subr.bf16.mxu1 %v2895_v33  ;;  %v2915_v33 = vpack.c.bf16 %v1650_v24, %v1646_v23  ;;  %v1681_v20 = vld [vmem:[#allocation5 + $0x10b0] sm:$0xff]  ;;  %v1688_v22 = vld [vmem:[#allocation5 + $0x10e8] sm:$0xff]  ;;  %v1686_v23 = vld [vmem:[#allocation5 + $0x10d8] sm:$0xff] }
 0x221   : > { %v1690_v24 = vld [vmem:[#allocation5 + $0x10f8] sm:$0xff] }
 0x222   : > { %2798 = vmatpush1.bf16.msra.mxu0 %v2797_v38  ;;  %v2817_v38 = vpack.c.bf16 %v1647_v30, %v1643_v29  ;;  %v1683_v29 = vld [vmem:[#allocation5 + $0x10c0] sm:$0xff] }
 0x223   : > { %2898 = vmatpush1.bf16.msra.mxu1 %v2897_v39  ;;  %2800 = vmatprep.subr.bf16.mxu0 %v2799_v40  ;;  %v2917_v39 = vpack.c.bf16 %v1649_v34, %v1645_v31  ;;  %v2819_v40 = vpack.c.bf16 %v1656_v36, %v1652_v35  ;;  %v1687_v30 = vld [vmem:[#allocation5 + $0x10e0] sm:$0xff]  ;;  %v1685_v31 = vld [vmem:[#allocation5 + $0x10d0] sm:$0xff]  ;;  %v1692_v35 = vld [vmem:[#allocation5 + $0x1108] sm:$0xff] }
 0x224   : > { %2900 = vmatprep.subr.bf16.mxu1 %v2899_v44  ;;  %v2919_v44 = vpack.c.bf16 %v1658_v16, %v1654_v37  ;;  %v1689_v34 = vld [vmem:[#allocation5 + $0x10f0] sm:$0xff]  ;;  %v1696_v36 = vld [vmem:[#allocation5 + $0x1128] sm:$0xff]  ;;  %v1694_v37 = vld [vmem:[#allocation5 + $0x1118] sm:$0xff] }
 0x225   : > { %v1698_v16 = vld [vmem:[#allocation5 + $0x1138] sm:$0xff] }
 0x226   : > { %2802 = vmatpush1.bf16.msra.mxu0 %v2801_v52  ;;  %v2821_v52 = vpack.c.bf16 %v1655_v42, %v1651_v41  ;;  %v1691_v41 = vld [vmem:[#allocation5 + $0x1100] sm:$0xff] }
 0x227   : > { %2902 = vmatpush1.bf16.msra.mxu1 %v2901_v19  ;;  %2804 = vmatprep.subr.bf16.mxu0 %v2803_v53  ;;  %v2921_v19 = vpack.c.bf16 %v1657_v45, %v1653_v43  ;;  %v2823_v53 = vpack.c.bf16 %v1664_v47, %v1660_v46  ;;  %v1695_v42 = vld [vmem:[#allocation5 + $0x1120] sm:$0xff]  ;;  %v1693_v43 = vld [vmem:[#allocation5 + $0x1110] sm:$0xff]  ;;  %v1700_v46 = vld [vmem:[#allocation5 + $0x1148] sm:$0xff] }
 0x228   : > { %2904 = vmatprep.subr.bf16.mxu1 %v2903_v57  ;;  %v2923_v57 = vpack.c.bf16 %v1666_v51, %v1662_v48  ;;  %v1697_v45 = vld [vmem:[#allocation5 + $0x1130] sm:$0xff]  ;;  %v1704_v47 = vld [vmem:[#allocation5 + $0x1168] sm:$0xff]  ;;  %v1702_v48 = vld [vmem:[#allocation5 + $0x1158] sm:$0xff] }
 0x229   : > { %v1706_v51 = vld [vmem:[#allocation5 + $0x1178] sm:$0xff] }
 0x22a   : > { %2806 = vmatpush1.bf16.msra.mxu0 %v2805_v63  ;;  %v2825_v63 = vpack.c.bf16 %v1663_v55, %v1659_v54  ;;  %v1703_v54 = vld [vmem:[#allocation5 + $0x1160] sm:$0xff]  ;;  %v1701_v55 = vld [vmem:[#allocation5 + $0x1150] sm:$0xff] }
 0x22b   : > { %2906 = vmatpush1.bf16.msra.mxu1 %v2905_v0  ;;  %2808 = vmatprep.subr.bf16.mxu0 %v2807_v1  ;;  %v2925_v0 = vpack.c.bf16 %v1665_v58, %v1661_v56  ;;  %v2827_v1 = vpack.c.bf16 %v1672_v60, %v1668_v59  ;;  %v2943_v56 = vpack.c.bf16 %v1706_v51, %v1702_v48  ;;  %v1708_v58 = vld [vmem:[#allocation5 + $0x1188] sm:$0xff]  ;;  %v1710_v60 = vld [vmem:[#allocation5 + $0x1198] sm:$0xff] }
 0x22c   : > { %2908 = vmatprep.subr.bf16.mxu1 %v2907_v5  ;;  %v2927_v5 = vpack.c.bf16 %v1674_v62, %v1670_v61  ;;  %v1712_v59 = vld [vmem:[#allocation5 + $0x11a8] sm:$0xff]  ;;  %v1714_v61 = vld [vmem:[#allocation5 + $0x11b8] sm:$0xff] }
 0x22e   : > { %2810 = vmatpush1.bf16.msra.mxu0 %v2809_v11  ;;  %v2829_v11 = vpack.c.bf16 %v1671_v3, %v1667_v2  ;;  %v1709_v2 = vld [vmem:[#allocation5 + $0x1190] sm:$0xff]  ;;  %v2947_v3 = vpack.c.bf16 %v1714_v61, %v1710_v60 }
 0x22f   : > { %2910 = vmatpush1.bf16.msra.mxu1 %v2909_v12  ;;  %2812 = vmatprep.subr.bf16.mxu0 %v2811_v13  ;;  %v2929_v12 = vpack.c.bf16 %v1673_v6, %v1669_v4  ;;  %v2831_v13 = vpack.c.bf16 %v1680_v8, %v1676_v7  ;;  %v1713_v4 = vld [vmem:[#allocation5 + $0x11b0] sm:$0xff]  ;;  %v1720_v6 = vld [vmem:[#allocation5 + $0x11e8] sm:$0xff]  ;;  %v1718_v7 = vld [vmem:[#allocation5 + $0x11d8] sm:$0xff] }
 0x230   : > { %2912 = vmatprep.subr.bf16.mxu1 %v2911_v18  ;;  %v2931_v18 = vpack.c.bf16 %v1682_v10, %v1678_v9  ;;  %v1722_v8 = vld [vmem:[#allocation5 + $0x11f8] sm:$0xff]  ;;  %v2949_v10 = vpack.c.bf16 %v1713_v4, %v1709_v2 }
 0x232   : > { %2814 = vmatpush1.bf16.msra.mxu0 %v2813_v25  ;;  %v2833_v25 = vpack.c.bf16 %v1679_v15, %v1675_v14  ;;  %v1717_v14 = vld [vmem:[#allocation5 + $0x11d0] sm:$0xff]  ;;  %v2951_v15 = vpack.c.bf16 %v1722_v8, %v1718_v7 }
 0x233   : > { %2914 = vmatpush1.bf16.msra.mxu1 %v2913_v26  ;;  %2816 = vmatprep.subr.bf16.mxu0 %v2815_v28  ;;  %v2933_v26 = vpack.c.bf16 %v1681_v20, %v1677_v17  ;;  %v2835_v28 = vpack.c.bf16 %v1688_v22, %v1684_v21  ;;  %v1721_v17 = vld [vmem:[#allocation5 + $0x11f0] sm:$0xff]  ;;  %v1728_v20 = vld [vmem:[#allocation5 + $0x1228] sm:$0xff]  ;;  %v1726_v21 = vld [vmem:[#allocation5 + $0x1218] sm:$0xff] }
 0x234   : > { %2916 = vmatprep.subr.bf16.mxu1 %v2915_v33  ;;  %v2935_v33 = vpack.c.bf16 %v1690_v24, %v1686_v23  ;;  %v1730_v22 = vld [vmem:[#allocation5 + $0x1238] sm:$0xff]  ;;  %v2953_v24 = vpack.c.bf16 %v1721_v17, %v1717_v14 }
 0x236   : > { %2818 = vmatpush1.bf16.msra.mxu0 %v2817_v38  ;;  %v2837_v38 = vpack.c.bf16 %v1687_v30, %v1683_v29  ;;  %v1725_v29 = vld [vmem:[#allocation5 + $0x1210] sm:$0xff]  ;;  %v2955_v30 = vpack.c.bf16 %v1730_v22, %v1726_v21 }
 0x237   : > { %2918 = vmatpush1.bf16.msra.mxu1 %v2917_v39  ;;  %2820 = vmatprep.subr.bf16.mxu0 %v2819_v40  ;;  %v2937_v39 = vpack.c.bf16 %v1689_v34, %v1685_v31  ;;  %v2839_v40 = vpack.c.bf16 %v1696_v36, %v1692_v35  ;;  %v1729_v31 = vld [vmem:[#allocation5 + $0x1230] sm:$0xff]  ;;  %v1736_v34 = vld [vmem:[#allocation5 + $0x1268] sm:$0xff]  ;;  %v1734_v35 = vld [vmem:[#allocation5 + $0x1258] sm:$0xff] }
 0x238   : > { %2920 = vmatprep.subr.bf16.mxu1 %v2919_v44  ;;  %v2939_v44 = vpack.c.bf16 %v1698_v16, %v1694_v37  ;;  %v1738_v36 = vld [vmem:[#allocation5 + $0x1278] sm:$0xff]  ;;  %v2957_v16 = vpack.c.bf16 %v1729_v31, %v1725_v29 }
 0x23a   : > { %2822 = vmatpush1.bf16.msra.mxu0 %v2821_v52  ;;  %v2941_v52 = vpack.c.bf16 %v1697_v45, %v1693_v43  ;;  %v1737_v43 = vld [vmem:[#allocation5 + $0x1270] sm:$0xff]  ;;  %v1744_v45 = vld [vmem:[#allocation5 + $0x12a8] sm:$0xff] }
 0x23b   : > { %2922 = vmatpush1.bf16.msra.mxu1 %v2921_v19  ;;  %2824 = vmatprep.subr.bf16.mxu0 %v2823_v53  ;;  %v2843_v19 = vpack.c.bf16 %v1704_v47, %v1700_v46  ;;  %v1699_v53 = vld [vmem:[#allocation5 + $0x1140] sm:$0xff]  ;;  %v1742_v46 = vld [vmem:[#allocation5 + $0x1298] sm:$0xff] }
 0x23c   : > { %2924 = vmatprep.subr.bf16.mxu1 %v2923_v57  ;;  %v1705_v57 = vld [vmem:[#allocation5 + $0x1170] sm:$0xff]  ;;  %v2845_v62 = vpack.c.bf16 %v1703_v54, %v1699_v53  ;;  %v1746_v47 = vld [vmem:[#allocation5 + $0x12b8] sm:$0xff] }
 0x23d   : > { %v2963_v53 = vpack.c.bf16 %v1746_v47, %v1742_v46  ;;  %v1741_v54 = vld [vmem:[#allocation5 + $0x1290] sm:$0xff] }
 0x23e   : > { %2826 = vmatpush1.bf16.msra.mxu0 %v2825_v63  ;;  %v2847_v63 = vpack.c.bf16 %v1712_v59, %v1708_v58  ;;  %v247_v58 = vld [vmem:[%s3554_s3] sm:$0xff]  ;;  %v3220_v59 = vmov 0  }
 0x23f   : > { %2926 = vmatpush1.bf16.msra.mxu1 %v2925_v0  ;;  %2828 = vmatprep.subr.bf16.mxu0 %v2827_v1  ;;  %v1707_v0 = vld [vmem:[#allocation5 + $0x1180] sm:$0xff] }
 0x240   : > { %2928 = vmatprep.subr.bf16.mxu1 %v2927_v5  ;;  %v1711_v1 = vld [vmem:[#allocation5 + $0x11a0] sm:$0xff]  ;;  %v1716_v5 = vld [vmem:[#allocation5 + $0x11c8] sm:$0xff]  ;;  %3064 = vset.pattern.permute.xlu0 %v3220_v59 }
 0x241   : > { %v2849_v9 = vpack.c.bf16 %v1711_v1, %v1707_v0  ;;  %2196 = vperm.xlu0 %3064, %v247_v58  }
 0x242   : > { %2830 = vmatpush1.bf16.msra.mxu0 %v2829_v11  ;;  %v2851_v11 = vpack.c.bf16 %v1720_v6, %v1716_v5 }
 0x243   : > { %2930 = vmatpush1.bf16.msra.mxu1 %v2929_v12  ;;  %2832 = vmatprep.subr.bf16.mxu0 %v2831_v13  ;;  %v1715_v12 = vld [vmem:[#allocation5 + $0x11c0] sm:$0xff] }
 0x244   : > { %2932 = vmatprep.subr.bf16.mxu1 %v2931_v18  ;;  %v1719_v13 = vld [vmem:[#allocation5 + $0x11e0] sm:$0xff]  ;;  %v1724_v18 = vld [vmem:[#allocation5 + $0x1208] sm:$0xff] }
 0x245   : > { %1812 = vmatmul.mubr.f32.vlgmr.msra.gmra.mrb[6].mxu0 %v3438_v27  ;;  %v2853_v23 = vpack.c.bf16 %v1719_v13, %v1715_v12 }
 0x246   : > { %2834 = vmatpush1.bf16.msra.mxu0 %v2833_v25  ;;  %1954 = vmatmul.mubr.f32.vlgmr.msra.gmra.mrb[6].mxu1 %v3438_v27  ;;  %v2841_v27 = vpack.c.bf16 %v1695_v42, %v1691_v41  ;;  %v2855_v25 = vpack.c.bf16 %v1728_v20, %v1724_v18  ;;  %v1733_v41 = vld [vmem:[#allocation5 + $0x1250] sm:$0xff]  ;;  %v2959_v42 = vpack.c.bf16 %v1738_v36, %v1734_v35 }
 0x247   : > { %2934 = vmatpush1.bf16.msra.mxu1 %v2933_v26  ;;  %2836 = vmatprep.subr.bf16.mxu0 %v2835_v28  ;;  %v1723_v26 = vld [vmem:[#allocation5 + $0x1200] sm:$0xff]  ;;  %v2961_v51 = vpack.c.bf16 %v1737_v43, %v1733_v41 }
 0x248   : > { %2936 = vmatprep.subr.bf16.mxu1 %v2935_v33  ;;  %2351 = vmatprep.mubr.msk.f32.mxu0 %vm455_vm0, %v3426_v32  ;;  %v1727_v28 = vld [vmem:[#allocation5 + $0x1220] sm:$0xff]  ;;  %v1732_v33 = vld [vmem:[#allocation5 + $0x1248] sm:$0xff] }
 0x249   : > { %2352 = vmatprep.mubr.msk.f32.mxu1 %vm455_vm0, %v3426_v32  ;;  %v2945_v32 = vpack.c.bf16 %v1705_v57, %v1701_v55  ;;  %v2857_v37 = vpack.c.bf16 %v1727_v28, %v1723_v26  ;;  %v1745_v55 = vld [vmem:[#allocation5 + $0x12b0] sm:$0xff] }
 0x24a   : > { %2838 = vmatpush1.bf16.msra.mxu0 %v2837_v38  ;;  %v2859_v38 = vpack.c.bf16 %v1736_v34, %v1732_v33  ;;  %v2965_v57 = vpack.c.bf16 %v1745_v55, %v1741_v54 }
 0x24b   : > { %2938 = vmatpush1.bf16.msra.mxu1 %v2937_v39  ;;  %2840 = vmatprep.subr.bf16.mxu0 %v2839_v40  ;;  %v1731_v39 = vld [vmem:[#allocation5 + $0x1240] sm:$0xff] }
 0x24c   : > { %2940 = vmatprep.subr.bf16.mxu1 %v2939_v44  ;;  %v1735_v40 = vld [vmem:[#allocation5 + $0x1260] sm:$0xff]  ;;  %v1740_v44 = vld [vmem:[#allocation5 + $0x1288] sm:$0xff] }
 0x24d   : > { %v2861_v48 = vpack.c.bf16 %v1735_v40, %v1731_v39 }
 0x24e   : > { %2842 = vmatpush1.bf16.msra.mxu0 %v2841_v27  ;;  %v2863_v27 = vpack.c.bf16 %v1744_v45, %v1740_v44 }
 0x24f   : > { %2942 = vmatpush1.bf16.msra.mxu1 %v2941_v52  ;;  %2844 = vmatprep.subr.bf16.mxu0 %v2843_v19  ;;  %v1739_v52 = vld [vmem:[#allocation5 + $0x1280] sm:$0xff] }
 0x250   : > { %2944 = vmatprep.subr.bf16.mxu1 %v2943_v56  ;;  %v1743_v19 = vld [vmem:[#allocation5 + $0x12a0] sm:$0xff] }
 0x251   : > { %v2865_v56 = vpack.c.bf16 %v1743_v19, %v1739_v52 }
 0x252   : > { %2846 = vmatpush1.bf16.msra.mxu0 %v2845_v62 }
 0x253   : > { %2946 = vmatpush1.bf16.msra.mxu1 %v2945_v32  ;;  %2848 = vmatprep.subr.bf16.mxu0 %v2847_v63  ;;  %v2353_v32 = vld [vmem:[%s3553_s2 + $0x10] sm:$0xff] }
 0x254   : > { %2948 = vmatprep.subr.bf16.mxu1 %v2947_v3 }
 0x256   : > { %2850 = vmatpush1.bf16.msra.mxu0 %v2849_v9 }
 0x257   : > { %2950 = vmatpush1.bf16.msra.mxu1 %v2949_v10  ;;  %2852 = vmatprep.subr.bf16.mxu0 %v2851_v11 }
 0x258   : > { %2952 = vmatprep.subr.bf16.mxu1 %v2951_v15 }
 0x25a   : > { %2854 = vmatpush1.bf16.msra.mxu0 %v2853_v23 }
 0x25b   : > { %2954 = vmatpush1.bf16.msra.mxu1 %v2953_v24  ;;  %2856 = vmatprep.subr.bf16.mxu0 %v2855_v25 }
 0x25c   : > { %2956 = vmatprep.subr.bf16.mxu1 %v2955_v30 }
 0x25e   : > { %2858 = vmatpush1.bf16.msra.mxu0 %v2857_v37 }
 0x25f   : > { %2958 = vmatpush1.bf16.msra.mxu1 %v2957_v16  ;;  %2860 = vmatprep.subr.bf16.mxu0 %v2859_v38 }
 0x260   : > { %2960 = vmatprep.subr.bf16.mxu1 %v2959_v42 }
 0x262   : > { %2862 = vmatpush1.bf16.msra.mxu0 %v2861_v48 }
 0x263   : > { %2962 = vmatpush1.bf16.msra.mxu1 %v2961_v51  ;;  %2864 = vmatprep.subr.bf16.mxu0 %v2863_v27 }
 0x264   : > { %2964 = vmatprep.subr.bf16.mxu1 %v2963_v53 }
 0x266   : > { %2866 = vmatpush1.bf16.msra.mxu0 %v2865_v56 }
 0x267   : > { %2966 = vmatpush1.bf16.msra.mxu1 %v2965_v57 }
 0x269   : > { %1883 = vmatmul.mubr.f32.vlgmr.msra.gmra.mrb[6].mxu0 %v3446_v49 }
 0x26a   : > { %2025 = vmatmul.mubr.f32.vlgmr.msra.gmra.mrb[6].mxu1 %v3446_v49  ;;  %2112 = vmatprep.mubr.f32.mxu0 %v3219_v50 }
 0x26b   : > { %2183 = vmatprep.mubr.f32.mxu1 %v3219_v50 }
 0x2c0   : > { %v2197_v50 = vpop.permute.xlu0 %2196 }
 0x33c   : > { %v1884_v60 = vpop.f32.mrb[6].mxu0 }
 0x33d   : > { %v2026_v61 = vpop.f32.mrb[6].mxu1  ;;  %v1886_v62 = vpop.f32.mrb[7].mxu0 }
 0x33e   : > { %v2028_v49 = vpop.f32.mrb[7].mxu1  ;;  %2354 = vmatprep.subr.msk.mxu0 %vm1234_vm1, %v1886_v62 }
 0x33f   : > { %2357 = vmatprep.subr.msk.mxu1 %vm1234_vm1, %v2028_v49  ;;  %2355 = vmatpush1.msk.msra.mxu0 %vm1234_vm1, %v1884_v60 }
 0x340   : > { %2358 = vmatpush1.msk.msra.mxu1 %vm1234_vm1, %v2026_v61  ;;  %2356 = vmatmul.mubr.msk.f32.vlgmr.msra.gmra.mrb[4].mxu0 %vm1230_vm2, %v2353_v32 }
 0x341   : > { %2359 = vmatmul.mubr.msk.f32.vlgmr.msra.gmra.mrb[4].mxu1 %vm1230_vm2, %v2353_v32 }
 0x413   : > { %v2114_v63 = vpop.f32.mrb[4].mxu0 }
 0x414   : > { %v2185_v0 = vpop.f32.mrb[4].mxu1  ;;  %v2199_v1 = vadd.f32 %v2197_v50, %v2114_v63  ;;  %v2116_v2 = vpop.f32.mrb[5].mxu0 }
 0x415   : > { %v2201_v3 = vadd.f32 %v2197_v50, %v2185_v0  ;;  %v2200_v4 = vadd.f32 %v2197_v50, %v2116_v2  ;;  %v2187_v5 = vpop.f32.mrb[5].mxu1 }
 0x416   : > { %v2203_v6 = vmax.f32 %v2199_v1, 0.0  ;;  %v2202_v7 = vadd.f32 %v2197_v50, %v2187_v5 }
 0x417   : > { %v2205_v8 = vmax.f32 %v2201_v3, 0.0  ;;  %v2204_v9 = vmax.f32 %v2200_v4, 0.0 }
 0x418   : > { %2207 = vst [vmem:[%s246_s24] sm:$0xff] %v2203_v6  ;;  %v2206_v10 = vmax.f32 %v2202_v7, 0.0 }
 0x419   : > { %2209 = vst [vmem:[%s246_s24 + $0x10] sm:$0xff] %v2205_v8  ;;  %2208 = vst [vmem:[%s246_s24 + $0x8] sm:$0xff] %v2204_v9 }
 0x41a   : > { %2210 = vst.msk [vmem:[%s246_s24 + $0x18] sm:$0xff] %vm455_vm0, %v2206_v10 }
 0x41b   : > { %3140 = shalt.err (!%p3137_p5)
}
 0x41c   : > { %s3141_s6 = scalar_lea.hbm %s3501_s7, 512  ;;  %s3145_s28 = scalar_lea.hbm %s3555_s4, 1024 }
 0x41d   : > { %p3142_p9 = scmp.ne.s32.totalorder %s3501_s7, %s3141_s6  ;;  %p3146_p7 = scmp.lt.u32.totalorder %s3501_s7, %s3555_s4 }
 0x41e   : > { %p3147_p3 = scmp.lt.u32.totalorder %s3145_s28, %s3141_s6  ;;  %p3149_p4 = scmp.lt.u32.totalorder %s3141_s6, %s3501_s7 }
 0x41f   : > { %p3143_p1 = pnand %p3142_p9, %p3343_p10 }
 0x420   : > { %p3148_p13 = por %p3147_p3, %p3146_p7 }
 0x421   : > { %p3144_p2 = pneg %p3143_p1 }
 0x422   : > { %p3150_p6 = por %p3149_p4, %p3148_p13 }
 0x424   : > { %p3151_p8 = pnand %p3150_p6, %p3144_p2 }
 0x426   : > { %3154 = shalt.err (!%p3151_p8)
}
 0x427   : > { %2993 = dma.vmem_to_hbm [thread:$0]  (%p3343_p10), %s3503_s30, 512, %s3501_s7, %s2212_s18  }
 0x428 PF: > { %s2240_s13 = sand.u32 1, %s3193_s15   ;;  %p3573_p12 = scmp.ne.s32.totalorder %s3563_s26, 0 }
 0x429   : > { %p3574_p11 = scmp.ge.s32.totalorder %s3213_s20, 2  ;;  %s2241_s24 = scalar_lea.sflag [#allocation4], %s2240_s13 }
 0x42b   : > { %p3004_p0 = pnand %p3574_p11, %p3573_p12 }
 0x42d   : > { %3188 = dma.done.wait (!%p3004_p0), %s2241_s24, 512  }
 0x42e   : > { %3190 = vsyncadd (!%p3004_p0), %s2241_s24, 4294966784  ;;  %s21_s20 = sadd.s32 1, %s3213_s20   ;;  %s3575_s15 = smov %s3197_s16 }
 0x42f   : > { %p18_p5 = scmp.ge.s32.totalorder %s21_s20, 4   ;;  %s3576_s16 = smov %s3201_s17 }
 0x430   : > { %s3577_s17 = smov %s3352_s10  ;;  %s3578_s18 = smov %s3209_s19 }
 0x431   : > { %s3579_s19 = smov %s3581_s5  ;;  %20 = sbr.rel (!%p18_p5) target bundleno = 7 (0x7), region = 89 }
 0x438   :  { %2246 = vsyncpa [#allocation3], 1 }
 0x439   :  { %2248 = vsyncpa [#allocation3 + $0x1], 1 }
 0x43a   :  { %2249 = vsyncpa [#allocation6], 1 }
 0x43b   :  { %2250 = vsyncpa [#allocation4], 1 }
 0x43c   :  { %2252 = vsyncpa [#allocation4 + $0x1], 1 }

</bundles_post_ra>
